<compile_context>
chip_gen: v6e
topology: v6e:2x2x1
jax: 0.10.0
libtpu: 0.0.40
codegen_flags: <defaults>
</compile_context>

<pallas_src>
import functools

import jax
import jax.numpy as jnp
from jax.experimental import pallas as pl
from jax.experimental.pallas import tpu as pltpu


# ---------------------------------------------------------------------------
# Fused sep_mlp + a_common_mlp kernel (per mixture / pixel-tile / object)
# ---------------------------------------------------------------------------
def _leaky_relu(x, slope=0.2):
    return jnp.where(x >= 0, x, slope * x)


def _fused_mlp_kernel(x_ref, vb_ref, w1a_ref, w2f_ref, w3_ref, w4f_ref,
                      vecs_ref, fa_ref, sums_ref, *, nmo, tile_px, ft):
    # x_ref:    (1, tile_px, D)   bf16  audio pixel rows (shared across NMO)
    # vb_ref:   (1, 1, 2D)        f32   per-source bias = fv_pooled @ w1b + b1
    # w*_ref:   bf16 weight matrices (BN1 / BN3 folded into w2f / w4f)
    # vecs_ref: (5, D) f32 rows = [b2f, s2, t2, b3, b4f]
    # fa_ref:   (1, tile_px, D)         per-pixel fa output (lane-dense)
    # sums_ref: (1, NMO, 2, D)    f32   per-mixture resident accumulator:
    #                                   row 0 = sum_px(fa), row 1 = sum_px(fa_common_norm)
    t = pl.program_id(1)
    m = pl.program_id(2)

    @pl.when(jnp.logical_and(t == 0, m == 0))
    def _():
        sums_ref[...] = jnp.zeros_like(sums_ref)

    x = x_ref[0]                                   # (tile_px, D) bf16
    vb = vb_ref[0]                                 # (1, 2D) f32

    b2f = vecs_ref[0:1, :]
    s2 = vecs_ref[1:2, :]
    t2 = vecs_ref[2:3, :]
    b3 = vecs_ref[3:4, :]
    b4f = vecs_ref[4:5, :]

    # sep_mlp conv1 (audio half; visual half + b1 pre-folded into vb)
    h = jnp.dot(x, w1a_ref[...], preferred_element_type=jnp.float32) + vb
    h = _leaky_relu(h.astype(jnp.bfloat16))        # bf16 activation (feeds next MXU)
    # conv2 with BN1 folded into (w2f, b2f); LeakyReLU; BN2 kept (fa is an output)
    h = jnp.dot(h, w2f_ref[...], preferred_element_type=jnp.float32) + b2f
    fa = _leaky_relu(h) * s2 + t2                  # (tile_px, D) f32

    # a_common_mlp: conv3 -> LeakyReLU -> BN3 (folded into w4f/b4f) -> conv4
    h = jnp.dot(fa.astype(jnp.bfloat16), w3_ref[...],
                preferred_element_type=jnp.float32) + b3
    h = _leaky_relu(h.astype(jnp.bfloat16))
    fc = jnp.dot(h, w4f_ref[...], preferred_element_type=jnp.float32) + b4f

    # per-pixel L2 channel normalization (rsqrt -> EUP slot, nearly free)
    inv = jax.lax.rsqrt(jnp.maximum(jnp.sum(fc * fc, axis=-1, keepdims=True),
                                    1e-24))
    fac = fc * inv

    # per-pixel fa output (lane-dense whenever D % 128 == 0)
    fa_ref[0] = fa.astype(fa_ref.dtype)

    # per-source pixel sums; mask garbage rows of a ragged last pixel tile
    if ft % tile_px != 0:
        rows = jax.lax.broadcasted_iota(jnp.int32, (tile_px, 1), 0)
        valid = (t * tile_px + rows) < ft
        fa_s = jnp.sum(jnp.where(valid, fa, 0.0), axis=0, keepdims=True)
        fac_s = jnp.sum(jnp.where(valid, fac, 0.0), axis=0, keepdims=True)
    else:
        fa_s = jnp.sum(fa, axis=0, keepdims=True)
        fac_s = jnp.sum(fac, axis=0, keepdims=True)
    row = jnp.concatenate([fa_s, fac_s], axis=0)   # (2, D) f32

    # scatter-add into the m-th object row of the resident per-mixture block
    d = row.shape[-1]
    sel = jax.lax.broadcasted_iota(jnp.int32, (nmo, 2, d), 0) == m
    contrib = jnp.where(sel, jnp.broadcast_to(row[None], (nmo, 2, d)), 0.0)
    sums_ref[0] = sums_ref[0] + contrib


def _default_tile_px(ft):
    cap = 1024                                   # safe on v7x (64 MiB VMEM)
    try:
        info = pltpu.get_tpu_info()
        if getattr(info, "vmem_capacity_bytes", 0) >= (100 << 20):
            cap = 2048                           # v5e / v6e: 128 MiB physical VMEM
    except Exception:
        pass
    if ft <= cap:
        return ft
    return max(8, (cap // 8) * 8)


def run_fused_mlp(fa_mix_cl, vis_bias, kparams, *, nmo, tile_px=None,
                  fa_dtype=jnp.float32):
    """fa_mix_cl: (B, F*T, D) f32 channels-last audio mixture (NOT broadcast over NMO).
    vis_bias: (N, 2D) f32 per-source visual bias.  Returns:
      fa   (N, FT, D) channels-last,
      sums (B, NMO, 2, D) f32 with [...,0,:] = sum_px(fa), [...,1,:] = sum_px(norm(fa_common)).
    Note: fa_dtype=jnp.bfloat16 halves the fa writeback on BW-limited parts (v5e)."""
    B, FT, D = fa_mix_cl.shape
    N = vis_bias.shape[0]
    assert N == B * nmo

    if tile_px is None:
        tile_px = _default_tile_px(FT)
    tile_px = min(tile_px, FT)
    if tile_px != FT:
        tile_px = max(8, (tile_px // 8) * 8)
    n_t = pl.cdiv(FT, tile_px)

    x = fa_mix_cl.astype(jnp.bfloat16)             # halve the dominant input stream
    vb3 = vis_bias[:, None, :]                     # (N, 1, 2D)
    w1a = kparams["w1a"]
    w2f = kparams["w2f"]
    w3 = kparams["w3"]
    w4f = kparams["w4f"]
    vecs = kparams["vecs"]

    def full_spec(a):
        nd = a.ndim
        return pl.BlockSpec(a.shape, lambda b, t, m, _nd=nd: (0,) * _nd)

    in_specs = [
        # shared audio pixel tile: block index constant across the innermost
        # object axis -> DMA issued once per (mixture, pixel tile), not NMO times
        pl.BlockSpec((1, tile_px, D), lambda b, t, m: (b, t, 0)),
        # tiny per-source visual bias row
        pl.BlockSpec((1, 1, 2 * D), lambda b, t, m: (b * nmo + m, 0, 0)),
        full_spec(w1a), full_spec(w2f), full_spec(w3), full_spec(w4f),
        full_spec(vecs),
    ]
    out_specs = [
        # per-pixel fa, written once per step
        pl.BlockSpec((1, tile_px, D), lambda b, t, m: (b * nmo + m, t, 0)),
        # per-mixture accumulator: VMEM-resident across the whole (t, m) sub-grid
        pl.BlockSpec((1, nmo, 2, D), lambda b, t, m: (b, 0, 0, 0)),
    ]
    out_shape = (
        jax.ShapeDtypeStruct((N, FT, D), fa_dtype),
        jax.ShapeDtypeStruct((B, nmo, 2, D), jnp.float32),
    )

    # VMEM budget: double-buffered blocks + resident params + live f32
    # intermediates (h is (tile_px, 2D) f32); capped at 48 MiB for v7x's 64 MiB.
    param_bytes = sum(int(a.size) * a.dtype.itemsize
                      for a in (w1a, w2f, w3, w4f, vecs))
    fa_item = jnp.dtype(fa_dtype).itemsize
    step_bytes = (2 * tile_px * D * 2              # bf16 x block (double-buffered)
                  + 2 * tile_px * D * fa_item      # fa out block (double-buffered)
                  + 2 * nmo * 2 * D * 4            # resident sums block
                  + 2 * 2 * D * 4                  # per-source bias row
                  + 2 * param_bytes                # weights / packed vectors
                  + tile_px * (2 * D * 4 + 3 * D * 4))  # live f32 intermediates
    vmem_limit = int(min(max(step_bytes + (6 << 20), 16 << 20), 48 << 20))

    kernel = functools.partial(_fused_mlp_kernel, nmo=nmo, tile_px=tile_px, ft=FT)

    fa, sums = pl.pallas_call(
        kernel,
        out_shape=out_shape,
        grid_spec=pltpu.PrefetchScalarGridSpec(
            num_scalar_prefetch=0,
            grid=(B, n_t, nmo),
            in_specs=in_specs,
            out_specs=out_specs),
        compiler_params=pltpu.CompilerParams(
            dimension_semantics=("parallel", "arbitrary", "arbitrary"),
            vmem_limit_bytes=vmem_limit),
    )(x, vb3, w1a, w2f, w3, w4f, vecs)
    return fa, sums


# ---------------------------------------------------------------------------
# Plain-JAX glue (tiny reductions / weight_mlp / output assembly)
# ---------------------------------------------------------------------------
def _normalize(x, axis, p=2, eps=1e-12):
    if p == 2:
        n = jnp.sqrt(jnp.sum(x * x, axis=axis, keepdims=True))
    else:
        n = jnp.sum(jnp.abs(x), axis=axis, keepdims=True)
    return x / jnp.maximum(n, eps)


def _cosine_sim(a, b, axis, eps=1e-8):
    an = jnp.sqrt(jnp.sum(a * a, axis=axis))
    bn = jnp.sqrt(jnp.sum(b * b, axis=axis))
    return jnp.sum(a * b, axis=axis) / (jnp.maximum(an, eps) * jnp.maximum(bn, eps))


def _weight_mlp_apply(f, params):
    """Conv1d(D,D,1) -> LeakyReLU(0.2) -> BN1d -> Conv1d(D,D,1) -> Sigmoid; f: (N, D)."""
    h = f @ params["wc1"] + params["bc1"]
    h = _leaky_relu(h)
    h = h * params["sc"] + params["tc"]
    h = h @ params["wc2"] + params["bc2"]
    return jax.nn.sigmoid(h)


def av_module_forward(fa_mix, valid_nums, fv_common_valid, params):
    B, D, F, T = fa_mix.shape
    N, _, H, W = fv_common_valid.shape
    NMO = valid_nums.shape[1]
    assert N == B * NMO  # TODO(synk): flatten_batch/organize_batch assumed all-valid reshapes
    FT = F * T

    outputs = {}
    outputs["contrast_fa_mix"] = jnp.broadcast_to(
        jnp.mean(fa_mix, axis=(-1, -2))[:, None, :], (B, NMO, D))

    fv_pooled = jnp.max(fv_common_valid, axis=(-1, -2))              # (N, D)
    vis_bias = fv_pooled @ params["w1b"] + params["b1"]              # (N, 2D)

    fa_mix_cl = fa_mix.transpose(0, 2, 3, 1).reshape(B, FT, D)       # channels-last pixels

    fa_cl, sums = run_fused_mlp(fa_mix_cl, vis_bias, params["kernel"], nmo=NMO)
    sums = sums.reshape(N, 2, D)
    mean_fa = sums[:, 0, :] / FT                                     # (N, D)
    mean_fac = sums[:, 1, :] / FT                                    # (N, D)

    fa_nchw = fa_cl.astype(jnp.float32).reshape(N, F, T, D).transpose(0, 3, 1, 2)
    outputs["visual_related_srcs_fa"] = fa_nchw.reshape(B, NMO, D, F, T)

    vr_fa_com = _normalize(mean_fac, axis=-1, p=2)                   # (N, D)
    outputs["visual_related_srcs_fa_com"] = vr_fa_com.reshape(B, NMO, D)

    # --- spatial attention branch ---
    cos_map = _cosine_sim(fv_common_valid, vr_fa_com[:, :, None, None], axis=1)  # (N, H, W)
    sound_loc = jax.nn.sigmoid(cos_map)  # TODO(synk): ParamSigmoid undefined in source; plain sigmoid
    sp_att = jnp.sum(sound_loc[:, None] * fv_common_valid, axis=(-1, -2))        # (N, D)
    sp_att = _normalize(sp_att, axis=-1, p=1)
    outputs["sp_att_fv_com"] = sp_att.reshape(B, NMO, D)
    outputs["sp_att_fv_com_valid"] = sp_att
    outputs["cos_map"] = cos_map.reshape(B, NMO, H, W)
    outputs["sound_localization"] = sound_loc.reshape(B, NMO, H, W)

    # --- channel attention branch (from in-kernel accumulators) ---
    f = sp_att * mean_fac                                            # (N, D)
    weight = _weight_mlp_apply(f, params)                            # (N, D)
    one_plus_w = 1.0 + weight
    pooled_n = one_plus_w * mean_fa                                  # mean_px((1+w)*fa)
    att_fa = one_plus_w[:, :, None, None] * fa_nchw                  # (N, D, F, T)

    outputs["channel_attention_weight"] = weight.reshape(B, NMO, D)
    outputs["visual_related_srcs_att_fa"] = att_fa.reshape(B, NMO, D, F, T)
    outputs["visual_related_srcs_att_fa_valid"] = att_fa
    outputs["visual_related_srcs_att_fa_pooled"] = pooled_n.reshape(B, NMO, D)

    outputs["consistent_feature"] = jnp.concatenate(
        [sp_att.reshape(B, NMO, D), pooled_n.reshape(B, NMO, D)], axis=2)
    outputs["av_context_feature"] = jnp.concatenate([sp_att, pooled_n], axis=1)
    outputs["y"] = jnp.concatenate(
        [jnp.broadcast_to(sp_att[:, :, None, None], (N, D, F, T)), att_fa], axis=1)
    return outputs


# ---------------------------------------------------------------------------
# Parameter init + one-time constant folding for the kernel
# ---------------------------------------------------------------------------
def prepare_params(raw):
    """One-time folding of eval-mode BN into the 1x1-conv weights (done once at
    parameter prep, NOT per call)."""
    d = raw["w2"].shape[1]
    params = dict(raw)
    params["w1a"] = raw["w1"][:d]          # audio half of conv1 (D, 2D)
    params["w1b"] = raw["w1"][d:]          # visual half (folded into per-n bias)
    # BN1 folded into conv2: (h*s1+t1) @ w2 + b2 = h @ (s1 o w2) + (t1 @ w2 + b2)
    w2f = raw["s1"].reshape(-1, 1) * raw["w2"]
    b2f = raw["t1"] @ raw["w2"] + raw["b2"]
    # BN3 folded into conv4
    w4f = raw["s3"].reshape(-1, 1) * raw["w4"]
    b4f = raw["t3"] @ raw["w4"] + raw["b4"]
    vecs = jnp.concatenate([b2f, raw["s2"], raw["t2"], raw["b3"], b4f], axis=0)  # (5, D)
    params["kernel"] = {
        "w1a": params["w1a"].astype(jnp.bfloat16),
        "w2f": w2f.astype(jnp.bfloat16),
        "w3": raw["w3"].astype(jnp.bfloat16),
        "w4f": w4f.astype(jnp.bfloat16),
        "vecs": vecs.astype(jnp.float32),
    }
    params["kernel_f32"] = {"w1a": params["w1a"], "w2f": w2f, "w3": raw["w3"],
                            "w4f": w4f, "vecs": vecs}
    return params


def init_params(key, d):
    c2 = 2 * d
    ks = jax.random.split(key, 24)
    it = iter(ks)

    def w(shape):
        return 0.1 * jax.random.normal(next(it), shape, jnp.float32)

    def b(c):
        return 0.05 * jax.random.normal(next(it), (1, c), jnp.float32)

    def bn(c):
        gamma = 1.0 + 0.05 * jax.random.normal(next(it), (1, c), jnp.float32)
        beta = 0.05 * jax.random.normal(next(it), (1, c), jnp.float32)
        return gamma / jnp.sqrt(1.0 + 1e-5), beta   # eval mode: mean=0, var=1

    raw = {}
    raw["w1"] = w((c2, c2)); raw["b1"] = b(c2)
    raw["s1"], raw["t1"] = bn(c2)
    raw["w2"] = w((c2, d)); raw["b2"] = b(d)
    raw["s2"], raw["t2"] = bn(d)
    raw["w3"] = w((d, d)); raw["b3"] = b(d)
    raw["s3"], raw["t3"] = bn(d)
    raw["w4"] = w((d, d)); raw["b4"] = b(d)
    raw["wc1"] = w((d, d)); raw["bc1"] = b(d)
    raw["sc"], raw["tc"] = bn(d)
    raw["wc2"] = w((d, d)); raw["bc2"] = b(d)
    return prepare_params(raw)


# ---------------------------------------------------------------------------
# Pure-JAX f32 reference of the fused-MLP path (for a numerical self-check)
# ---------------------------------------------------------------------------
def _reference_mlp(fa_mix_cl, vis_bias, kp32, nmo):
    x = jnp.repeat(fa_mix_cl, nmo, axis=0)             # (N, FT, D), n = b*nmo + m
    vb = vis_bias[:, None, :]
    v = kp32["vecs"]
    b2f, s2, t2, b3, b4f = (v[i:i + 1] for i in range(5))
    h = _leaky_relu(x @ kp32["w1a"] + vb)
    fa = _leaky_relu(h @ kp32["w2f"] + b2f) * s2 + t2
    h = _leaky_relu(fa @ kp32["w3"] + b3)
    fc = h @ kp32["w4f"] + b4f
    nrm = jnp.maximum(jnp.sqrt(jnp.sum(fc * fc, axis=-1, keepdims=True)), 1e-12)
    fac = fc / nrm
    return fa, jnp.sum(fa, axis=1), jnp.sum(fac, axis=1)


# ---------------------------------------------------------------------------
if __name__ == "__main__":
    # D = 128 so fa / sums stores are full 128-lane (unmasked); N = B*NMO = 6.
    B, NMO, D, F, T, H, W = 2, 3, 128, 8, 8, 4, 4
    N = B * NMO
    FT = F * T

    key = jax.random.PRNGKey(0)
    k1, k2, kp = jax.random.split(key, 3)
    fa_mix = jax.random.normal(k1, (B, D, F, T), jnp.float32)
    fv_common_valid = jax.random.normal(k2, (N, D, H, W), jnp.float32)
    valid_nums = jnp.ones((B, NMO), jnp.int32)

    params = init_params(kp, D)

    # --- kernel numerical self-check vs pure-JAX f32 reference (bf16 tolerance) ---
    fa_mix_cl = fa_mix.transpose(0, 2, 3, 1).reshape(B, FT, D)
    fv_pooled = jnp.max(fv_common_valid, axis=(-1, -2))
    vis_bias = fv_pooled @ params["w1b"] + params["b1"]
    fa_k, sums_k = run_fused_mlp(fa_mix_cl, vis_bias, params["kernel"], nmo=NMO)
    fa_k = jax.block_until_ready(fa_k)
    fa_r, sfa_r, sfc_r = _reference_mlp(fa_mix_cl, vis_bias, params["kernel_f32"], NMO)
    sums_k = sums_k.reshape(N, 2, D)

    def _close(a, b, tag):
        err = float(jnp.max(jnp.abs(a.astype(jnp.float32) - b)))
        tol = 0.1 * float(jnp.max(jnp.abs(b))) + 0.25
        assert err <= tol, f"{tag}: max err {err:.4f} > tol {tol:.4f}"

    _close(fa_k, fa_r, "fa")
    _close(sums_k[:, 0, :], sfa_r, "sum_fa")
    _close(sums_k[:, 1, :], sfc_r, "sum_fa_common")

    # --- full forward + output-contract shape checks ---
    fwd = jax.jit(av_module_forward)
    outs = jax.block_until_ready(fwd(fa_mix, valid_nums, fv_common_valid, params))

    assert outs["visual_related_srcs_fa"].shape == (B, NMO, D, F, T)
    assert outs["visual_related_srcs_fa_com"].shape == (B, NMO, D)
    assert outs["sp_att_fv_com"].shape == (B, NMO, D)
    assert outs["visual_related_srcs_att_fa"].shape == (B, NMO, D, F, T)
    assert outs["visual_related_srcs_att_fa_pooled"].shape == (B, NMO, D)
    assert outs["sp_att_fv_com_valid"].shape == (N, D)
    assert outs["visual_related_srcs_att_fa_valid"].shape == (N, D, F, T)
    assert outs["cos_map"].shape == (B, NMO, H, W)
    assert outs["sound_localization"].shape == (B, NMO, H, W)
    assert outs["channel_attention_weight"].shape == (B, NMO, D)
    assert outs["av_context_feature"].shape == (N, 2 * D)
    assert outs["y"].shape == (N, 2 * D, F, T)
    assert outs["consistent_feature"].shape == (B, NMO, 2 * D)
    assert bool(jnp.all(jnp.isfinite(outs["y"])))

    print("KERNEL_OK")
</pallas_src>

<mosaic_0001>
module attributes {stable_mosaic.version = 11 : i64} {
  func.func @_fused_mlp_kernel(%arg0: i32, %arg1: i32, %arg2: i32, %arg3: memref<1x64x128xbf16, #tpu.memory_space<vmem>>, %arg4: memref<1x1x256xf32, #tpu.memory_space<vmem>>, %arg5: memref<128x256xbf16, #tpu.memory_space<vmem>>, %arg6: memref<256x128xbf16, #tpu.memory_space<vmem>>, %arg7: memref<128x128xbf16, #tpu.memory_space<vmem>>, %arg8: memref<128x128xbf16, #tpu.memory_space<vmem>>, %arg9: memref<5x128xf32, #tpu.memory_space<vmem>>, %arg10: memref<1x64x128xf32, #tpu.memory_space<vmem>>, %arg11: memref<1x3x2x128xf32, #tpu.memory_space<vmem>>) attributes {dimension_semantics = [#tpu.dimension_semantics<parallel>, #tpu.dimension_semantics<arbitrary>, #tpu.dimension_semantics<arbitrary>], iteration_bounds = array<i64: 2, 1, 3>, scalar_prefetch = 0 : i64, scratch_operands = 0 : i64, tpu.core_type = #tpu.core_type<tc>, window_params = [{transform_indices = @transform_0, window_bounds = array<i64: 1, 64, 128>}, {transform_indices = @transform_1, window_bounds = array<i64: 1, 1, 256>}, {pipeline_mode = #tpu.pipeline_mode<synchronous>, transform_indices = @transform_2, window_bounds = array<i64: 128, 256>}, {pipeline_mode = #tpu.pipeline_mode<synchronous>, transform_indices = @transform_3, window_bounds = array<i64: 256, 128>}, {pipeline_mode = #tpu.pipeline_mode<synchronous>, transform_indices = @transform_4, window_bounds = array<i64: 128, 128>}, {pipeline_mode = #tpu.pipeline_mode<synchronous>, transform_indices = @transform_5, window_bounds = array<i64: 128, 128>}, {pipeline_mode = #tpu.pipeline_mode<synchronous>, transform_indices = @transform_6, window_bounds = array<i64: 5, 128>}, {transform_indices = @transform_7, window_bounds = array<i64: 1, 64, 128>}, {transform_indices = @transform_8, window_bounds = array<i64: 1, 3, 2, 128>}]} {
    %c0_i32 = arith.constant 0 : i32
    %0 = arith.cmpi eq, %arg1, %c0_i32 : i32
    %c0_i32_0 = arith.constant 0 : i32
    %1 = arith.cmpi eq, %arg2, %c0_i32_0 : i32
    %2 = arith.andi %0, %1 : i1
    %3 = arith.extui %2 : i1 to i32
    %c0_i32_1 = arith.constant 0 : i32
    %4 = arith.cmpi ne, %3, %c0_i32_1 : i32
    scf.if %4 {
      %cst_46 = arith.constant 0.000000e+00 : f32
      %82 = vector.broadcast %cst_46 : f32 to vector<1x3x2x128xf32>
      %c0_47 = arith.constant 0 : index
      %c0_48 = arith.constant 0 : index
      %c0_49 = arith.constant 0 : index
      %c0_50 = arith.constant 0 : index
      %83 = vector.load %arg11[%c0_47, %c0_48, %c0_49, %c0_50] : memref<1x3x2x128xf32, #tpu.memory_space<vmem>>, vector<1x3x2x128xf32>
      tpu.vector_store %arg11[%c0_47, %c0_48, %c0_49, %c0_50], %82 {strides = array<i32>} : memref<1x3x2x128xf32, #tpu.memory_space<vmem>>, vector<1x3x2x128xf32>,
    } else {
    }
    %c0 = arith.constant 0 : index
    %c0_2 = arith.constant 0 : index
    %c0_3 = arith.constant 0 : index
    %5 = vector.load %arg3[%c0, %c0_2, %c0_3] : memref<1x64x128xbf16, #tpu.memory_space<vmem>>, vector<1x64x128xbf16>
    %6 = vector.shape_cast %5 : vector<1x64x128xbf16> to vector<64x128xbf16>
    %c0_4 = arith.constant 0 : index
    %c0_5 = arith.constant 0 : index
    %c0_6 = arith.constant 0 : index
    %7 = vector.load %arg4[%c0_4, %c0_5, %c0_6] : memref<1x1x256xf32, #tpu.memory_space<vmem>>, vector<1x1x256xf32>
    %8 = vector.shape_cast %7 : vector<1x1x256xf32> to vector<1x256xf32>
    %c0_7 = arith.constant 0 : index
    %c0_8 = arith.constant 0 : index
    %9 = vector.load %arg9[%c0_7, %c0_8] : memref<5x128xf32, #tpu.memory_space<vmem>>, vector<1x128xf32>
    %c1 = arith.constant 1 : index
    %c0_9 = arith.constant 0 : index
    %10 = vector.load %arg9[%c1, %c0_9] : memref<5x128xf32, #tpu.memory_space<vmem>>, vector<1x128xf32>
    %c2 = arith.constant 2 : index
    %c0_10 = arith.constant 0 : index
    %11 = vector.load %arg9[%c2, %c0_10] : memref<5x128xf32, #tpu.memory_space<vmem>>, vector<1x128xf32>
    %c3 = arith.constant 3 : index
    %c0_11 = arith.constant 0 : index
    %12 = vector.load %arg9[%c3, %c0_11] : memref<5x128xf32, #tpu.memory_space<vmem>>, vector<1x128xf32>
    %c4 = arith.constant 4 : index
    %c0_12 = arith.constant 0 : index
    %13 = vector.load %arg9[%c4, %c0_12] : memref<5x128xf32, #tpu.memory_space<vmem>>, vector<1x128xf32>
    %c0_13 = arith.constant 0 : index
    %c0_14 = arith.constant 0 : index
    %14 = vector.load %arg5[%c0_13, %c0_14] : memref<128x256xbf16, #tpu.memory_space<vmem>>, vector<128x256xbf16>
    %cst = arith.constant dense<0.000000e+00> : vector<64x256xf32>
    %15 = tpu.matmul %6, %14, %cst {dimension_numbers = #tpu.dot_dimension_numbers<[1], [0], [0], [1], [0, 0, 1, 1], [], []>} : vector<64x128xbf16>, vector<128x256xbf16>, vector<64x256xf32> -> vector<64x256xf32>
    %16 = vector.broadcast %8 : vector<1x256xf32> to vector<64x256xf32>
    %17 = arith.addf %15, %16 : vector<64x256xf32>
    %18 = arith.truncf %17 : vector<64x256xf32> to vector<64x256xbf16>
    %cst_15 = arith.constant 0.000000e+00 : bf16
    %19 = vector.broadcast %cst_15 : bf16 to vector<64x256xbf16>
    %20 = arith.cmpf oge, %18, %19 : vector<64x256xbf16>
    %cst_16 = arith.constant 2.001950e-01 : bf16
    %21 = vector.broadcast %cst_16 : bf16 to vector<64x256xbf16>
    %22 = arith.mulf %21, %18 : vector<64x256xbf16>
    %23 = arith.select %20, %18, %22 : vector<64x256xi1>, vector<64x256xbf16>
    %c0_17 = arith.constant 0 : index
    %c0_18 = arith.constant 0 : index
    %24 = vector.load %arg6[%c0_17, %c0_18] : memref<256x128xbf16, #tpu.memory_space<vmem>>, vector<256x128xbf16>
    %cst_19 = arith.constant dense<0.000000e+00> : vector<64x128xf32>
    %25 = tpu.matmul %23, %24, %cst_19 {dimension_numbers = #tpu.dot_dimension_numbers<[1], [0], [0], [1], [0, 0, 1, 1], [], []>} : vector<64x256xbf16>, vector<256x128xbf16>, vector<64x128xf32> -> vector<64x128xf32>
    %26 = vector.broadcast %9 : vector<1x128xf32> to vector<64x128xf32>
    %27 = arith.addf %25, %26 : vector<64x128xf32>
    %cst_20 = arith.constant 0.000000e+00 : f32
    %28 = vector.broadcast %cst_20 : f32 to vector<64x128xf32>
    %29 = arith.cmpf oge, %27, %28 : vector<64x128xf32>
    %cst_21 = arith.constant 2.000000e-01 : f32
    %30 = vector.broadcast %cst_21 : f32 to vector<64x128xf32>
    %31 = arith.mulf %30, %27 : vector<64x128xf32>
    %32 = arith.select %29, %27, %31 : vector<64x128xi1>, vector<64x128xf32>
    %33 = vector.broadcast %10 : vector<1x128xf32> to vector<64x128xf32>
    %34 = arith.mulf %32, %33 : vector<64x128xf32>
    %35 = vector.broadcast %11 : vector<1x128xf32> to vector<64x128xf32>
    %36 = arith.addf %34, %35 : vector<64x128xf32>
    %37 = arith.truncf %36 : vector<64x128xf32> to vector<64x128xbf16>
    %c0_22 = arith.constant 0 : index
    %c0_23 = arith.constant 0 : index
    %38 = vector.load %arg7[%c0_22, %c0_23] : memref<128x128xbf16, #tpu.memory_space<vmem>>, vector<128x128xbf16>
    %cst_24 = arith.constant dense<0.000000e+00> : vector<64x128xf32>
    %39 = tpu.matmul %37, %38, %cst_24 {dimension_numbers = #tpu.dot_dimension_numbers<[1], [0], [0], [1], [0, 0, 1, 1], [], []>} : vector<64x128xbf16>, vector<128x128xbf16>, vector<64x128xf32> -> vector<64x128xf32>
    %40 = vector.broadcast %12 : vector<1x128xf32> to vector<64x128xf32>
    %41 = arith.addf %39, %40 : vector<64x128xf32>
    %42 = arith.truncf %41 : vector<64x128xf32> to vector<64x128xbf16>
    %cst_25 = arith.constant 0.000000e+00 : bf16
    %43 = vector.broadcast %cst_25 : bf16 to vector<64x128xbf16>
    %44 = arith.cmpf oge, %42, %43 : vector<64x128xbf16>
    %cst_26 = arith.constant 2.001950e-01 : bf16
    %45 = vector.broadcast %cst_26 : bf16 to vector<64x128xbf16>
    %46 = arith.mulf %45, %42 : vector<64x128xbf16>
    %47 = arith.select %44, %42, %46 : vector<64x128xi1>, vector<64x128xbf16>
    %c0_27 = arith.constant 0 : index
    %c0_28 = arith.constant 0 : index
    %48 = vector.load %arg8[%c0_27, %c0_28] : memref<128x128xbf16, #tpu.memory_space<vmem>>, vector<128x128xbf16>
    %cst_29 = arith.constant dense<0.000000e+00> : vector<64x128xf32>
    %49 = tpu.matmul %47, %48, %cst_29 {dimension_numbers = #tpu.dot_dimension_numbers<[1], [0], [0], [1], [0, 0, 1, 1], [], []>} : vector<64x128xbf16>, vector<128x128xbf16>, vector<64x128xf32> -> vector<64x128xf32>
    %50 = vector.broadcast %13 : vector<1x128xf32> to vector<64x128xf32>
    %51 = arith.addf %49, %50 : vector<64x128xf32>
    %52 = arith.mulf %51, %51 : vector<64x128xf32>
    %cst_30 = arith.constant dense<0.000000e+00> : vector<64xf32>
    %53 = vector.multi_reduction <add>, %52, %cst_30 [1] : vector<64x128xf32> to vector<64xf32>
    %54 = vector.shape_cast %53 : vector<64xf32> to vector<64x1xf32>
    %cst_31 = arith.constant 1.000000e-24 : f32
    %55 = vector.broadcast %cst_31 : f32 to vector<64x1xf32>
    %56 = arith.maximumf %54, %55 : vector<64x1xf32>
    %57 = math.rsqrt %56 : vector<64x1xf32>
    %58 = vector.broadcast %57 : vector<64x1xf32> to vector<64x128xf32>
    %59 = arith.mulf %51, %58 : vector<64x128xf32>
    %c0_32 = arith.constant 0 : index
    %c0_33 = arith.constant 0 : index
    %c0_34 = arith.constant 0 : index
    %60 = vector.load %arg10[%c0_32, %c0_33, %c0_34] : memref<1x64x128xf32, #tpu.memory_space<vmem>>, vector<1x64x128xf32>
    %61 = vector.shape_cast %60 : vector<1x64x128xf32> to vector<64x128xf32>
    %62 = vector.shape_cast %36 : vector<64x128xf32> to vector<1x64x128xf32>
    tpu.vector_store %arg10[%c0_32, %c0_33, %c0_34], %62 {strides = array<i32>} : memref<1x64x128xf32, #tpu.memory_space<vmem>>, vector<1x64x128xf32>,
    %cst_35 = arith.constant dense<0.000000e+00> : vector<128xf32>
    %63 = vector.multi_reduction <add>, %36, %cst_35 [0] : vector<64x128xf32> to vector<128xf32>
    %64 = vector.shape_cast %63 : vector<128xf32> to vector<1x128xf32>
    %cst_36 = arith.constant dense<0.000000e+00> : vector<128xf32>
    %65 = vector.multi_reduction <add>, %59, %cst_36 [0] : vector<64x128xf32> to vector<128xf32>
    %66 = vector.shape_cast %65 : vector<128xf32> to vector<1x128xf32>
    %67 = tpu.concatenate %64, %66 in 0 : vector<1x128xf32>, vector<1x128xf32> -> vector<2x128xf32>
    %68 = tpu.iota {dimensions = array<i32: 0>} : vector<3x2x128xi32>
    %69 = vector.broadcast %arg2 : i32 to vector<3x2x128xi32>
    %70 = arith.cmpi eq, %68, %69 : vector<3x2x128xi32>
    %71 = vector.shape_cast %67 : vector<2x128xf32> to vector<1x2x128xf32>
    %72 = vector.shape_cast %71 : vector<1x2x128xf32> to vector<1x2x128xf32>
    %73 = vector.broadcast %72 : vector<1x2x128xf32> to vector<3x2x128xf32>
    %cst_37 = arith.constant 0.000000e+00 : f32
    %74 = vector.broadcast %cst_37 : f32 to vector<3x2x128xf32>
    %75 = arith.select %70, %73, %74 : vector<3x2x128xi1>, vector<3x2x128xf32>
    %c0_38 = arith.constant 0 : index
    %c0_39 = arith.constant 0 : index
    %c0_40 = arith.constant 0 : index
    %c0_41 = arith.constant 0 : index
    %76 = vector.load %arg11[%c0_38, %c0_39, %c0_40, %c0_41] : memref<1x3x2x128xf32, #tpu.memory_space<vmem>>, vector<1x3x2x128xf32>
    %77 = vector.shape_cast %76 : vector<1x3x2x128xf32> to vector<3x2x128xf32>
    %78 = arith.addf %77, %75 : vector<3x2x128xf32>
    %c0_42 = arith.constant 0 : index
    %c0_43 = arith.constant 0 : index
    %c0_44 = arith.constant 0 : index
    %c0_45 = arith.constant 0 : index
    %79 = vector.load %arg11[%c0_42, %c0_43, %c0_44, %c0_45] : memref<1x3x2x128xf32, #tpu.memory_space<vmem>>, vector<1x3x2x128xf32>
    %80 = vector.shape_cast %79 : vector<1x3x2x128xf32> to vector<3x2x128xf32>
    %81 = vector.shape_cast %78 : vector<3x2x128xf32> to vector<1x3x2x128xf32>
    tpu.vector_store %arg11[%c0_42, %c0_43, %c0_44, %c0_45], %81 {strides = array<i32>} : memref<1x3x2x128xf32, #tpu.memory_space<vmem>>, vector<1x3x2x128xf32>,
    return
  }
  func.func @transform_0(%arg0: i32, %arg1: i32, %arg2: i32) -> (i32, i32, i32) {
    %c0_i32 = arith.constant 0 : i32
    %c0_i32_0 = arith.constant 0 : i32
    return %arg0, %arg1, %c0_i32 : i32, i32, i32
  }
  func.func @transform_1(%arg0: i32, %arg1: i32, %arg2: i32) -> (i32, i32, i32) {
    %c3_i32 = arith.constant 3 : i32
    %0 = arith.muli %arg0, %c3_i32 : i32
    %1 = arith.addi %0, %arg2 : i32
    %c0_i32 = arith.constant 0 : i32
    %c0_i32_0 = arith.constant 0 : i32
    %c0_i32_1 = arith.constant 0 : i32
    return %1, %c0_i32, %c0_i32_0 : i32, i32, i32
  }
  func.func @transform_2(%arg0: i32, %arg1: i32, %arg2: i32) -> (i32, i32) {
    %c0_i32 = arith.constant 0 : i32
    %c0_i32_0 = arith.constant 0 : i32
    %c0_i32_1 = arith.constant 0 : i32
    return %c0_i32, %c0_i32_0 : i32, i32
  }
  func.func @transform_3(%arg0: i32, %arg1: i32, %arg2: i32) -> (i32, i32) {
    %c0_i32 = arith.constant 0 : i32
    %c0_i32_0 = arith.constant 0 : i32
    %c0_i32_1 = arith.constant 0 : i32
    return %c0_i32, %c0_i32_0 : i32, i32
  }
  func.func @transform_4(%arg0: i32, %arg1: i32, %arg2: i32) -> (i32, i32) {
    %c0_i32 = arith.constant 0 : i32
    %c0_i32_0 = arith.constant 0 : i32
    %c0_i32_1 = arith.constant 0 : i32
    return %c0_i32, %c0_i32_0 : i32, i32
  }
  func.func @transform_5(%arg0: i32, %arg1: i32, %arg2: i32) -> (i32, i32) {
    %c0_i32 = arith.constant 0 : i32
    %c0_i32_0 = arith.constant 0 : i32
    %c0_i32_1 = arith.constant 0 : i32
    return %c0_i32, %c0_i32_0 : i32, i32
  }
  func.func @transform_6(%arg0: i32, %arg1: i32, %arg2: i32) -> (i32, i32) {
    %c0_i32 = arith.constant 0 : i32
    %c0_i32_0 = arith.constant 0 : i32
    %c0_i32_1 = arith.constant 0 : i32
    return %c0_i32, %c0_i32_0 : i32, i32
  }
  func.func @transform_7(%arg0: i32, %arg1: i32, %arg2: i32) -> (i32, i32, i32) {
    %c3_i32 = arith.constant 3 : i32
    %0 = arith.muli %arg0, %c3_i32 : i32
    %1 = arith.addi %0, %arg2 : i32
    %c0_i32 = arith.constant 0 : i32
    %c0_i32_0 = arith.constant 0 : i32
    return %1, %arg1, %c0_i32 : i32, i32, i32
  }
  func.func @transform_8(%arg0: i32, %arg1: i32, %arg2: i32) -> (i32, i32, i32, i32) {
    %c0_i32 = arith.constant 0 : i32
    %c0_i32_0 = arith.constant 0 : i32
    %c0_i32_1 = arith.constant 0 : i32
    %c0_i32_2 = arith.constant 0 : i32
    return %arg0, %c0_i32, %c0_i32_0, %c0_i32_1 : i32, i32, i32, i32
  }
}

</mosaic_0001>

<bundles_post_ra>
// kernel: tpu_custom_call.1
= control target key start
LH: loop header
LB: loop body
LE: loop exit
PB: predicated region body
PF: predicated region fallthrough
CT: control target
= control target key end

     0   :  { %s2921_s0 = inlined_call_operand.hbm [shape: bf16[2,64,128], index: 0, kind: input, shape index: {}]   ;;  %s2922_s1 = inlined_call_operand.hbm [shape: f32[6,1,256], index: 1, kind: input, shape index: {}]   ;;  %s2923_s2 = inlined_call_operand.hbm [shape: bf16[128,256], index: 2, kind: input, shape index: {}]   ;;  %s2924_s3 = inlined_call_operand.hbm [shape: bf16[256,128], index: 3, kind: input, shape index: {}]   ;;  %s2925_s4 = inlined_call_operand.hbm [shape: bf16[128,128], index: 4, kind: input, shape index: {}]   ;;  %s2926_s5 = inlined_call_operand.hbm [shape: bf16[128,128], index: 5, kind: input, shape index: {}]   ;;  %s2927_s6 = inlined_call_operand.vmem [shape: f32[5,128], index: 6, kind: input, shape index: {}]   ;;  %s2928_s7 = inlined_call_operand.hbm [shape: f32[6,64,128], index: 7, kind: output, shape index: {0}]   ;;  %s2929_s8 = inlined_call_operand.hbm [shape: f32[2,3,2,128], index: 8, kind: output, shape index: {1}]  }
   0x1   :  { %2949 = sst [smem:[#allocation31_spill]] %s2921_s0 }
   0x2   :  { %2950 = sst [smem:[#allocation32_spill]] %s2923_s2 }
   0x3   :  { %2951 = sst [smem:[#allocation33_spill]] %s2924_s3 }
   0x4   :  { %2952 = sst [smem:[#allocation34_spill]] %s2925_s4 }
   0x5   :  { %2953 = sst [smem:[#allocation35_spill]] %s2926_s5 }
   0x6   :  { %2954 = sst [smem:[#allocation36_spill]] %s2928_s7 }
   0x7   :  { %2955 = sst [smem:[#allocation37_spill]] %s2929_s8 }
   0x8   :  { %14 = vsyncpa [#allocation3], 0 }
   0x9   :  { %16 = vsyncpa [#allocation3 + $0x1], 0 }
   0xa   :  { %17 = vsyncpa [#allocation6], 0 }
   0xb   :  { %19 = vsyncpa [#allocation6 + $0x1], 0 }
   0xc   :  { %20 = vsyncpa [#allocation9], 0 }
   0xd   :  { %21 = vsyncpa [#allocation12], 0 }
   0xe   :  { %22 = vsyncpa [#allocation4], 0 }
   0xf   :  { %24 = vsyncpa [#allocation4 + $0x1], 0 }
  0x10   :  { %25 = vsyncpa [#allocation15], 0 }
  0x11   :  { %27 = vsyncpa [#allocation15 + $0x1], 0  ;;  %s2427_s27 = smov 0   ;;  %s2429_s28 = smov 0  }
  0x12   :  { %s2431_s29 = smov 0   ;;  %s2433_s30 = smov 0  }
  0x13   :  { %s2435_s9 = smov 0   ;;  %s2437_s10 = smov 0  }
  0x14   :  { %s2439_s11 = smov 0   ;;  %s2441_s12 = smov 0  }
  0x15   :  { %s2443_s13 = smov 0   ;;  %s2445_s14 = smov 0  }
  0x16   :  { %s2447_s15 = smov 0  }
  0x17 LB: > { %2956 = sst [smem:[#allocation23_spill]] %s2322_s27  ;;  %s2483_s16 = sadd.s32 4294967295, %s2362_s15   ;;  %s2362_s15 = sphi %s2447_s15, %s33_s15   ;;  %s2358_s14 = sphi %s2445_s14, %s3007_s14   ;;  %s2354_s13 = sphi %s2443_s13, %s3006_s13   ;;  %s2350_s12 = sphi %s2441_s12, %s3005_s12   ;;  %s2346_s11 = sphi %s2439_s11, %s3004_s11   ;;  %s2342_s10 = sphi %s2437_s10, %s3013_s10   ;;  %s2338_s9 = sphi %s2435_s9, %s3012_s9   ;;  %s2334_s30 = sphi %s2433_s30, %s3011_s30   ;;  %s2330_s29 = sphi %s2431_s29, %s3010_s29   ;;  %s2326_s28 = sphi %s2429_s28, %s3009_s28   ;;  %s2322_s27 = sphi %s2427_s27, %s3008_s27  }
  0x18   : > { %2957 = sst [smem:[#allocation24_spill]] %s2354_s13  ;;  %p1595_p0 = scmp.ge.s32.totalorder %s2362_s15, 1 }
  0x19   : > { %2958 = sst [smem:[#allocation25_spill]] %s2358_s14  ;;  %p2935_p1 = scmp.eq.s32.totalorder %s2483_s16, 0 }
  0x1a   : > { %p278_p2 = scmp.lt.s32.totalorder %s2362_s15, 7  ;;  %s2364_s18 = smov [#allocation7]  }
  0x1b   : > { %s290_s19 = sshll.u32 %s2364_s18, 4  ;;  %s2365_s21 = smov [#allocation8]   ;;  %s291_s19 = int_to_ptr.vmem [resolvable:$true] %s290_s19 }
  0x1c   : > { %p2488_p3 = pnand %p1595_p0, %p278_p2  ;;  %s303_s22 = sshll.u32 %s2365_s21, 4  ;;  %s304_s22 = int_to_ptr.vmem [resolvable:$true] %s303_s22 }
  0x1d   : > { %s2047_s23 = scalar_lea.vmem %s291_s19, 2048  ;;  %p2055_p10 = scmp.lt.s32.totalorder %s291_s19, %s291_s19 }
  0x1e   : > { %p1821_p4 = pneg %p2488_p3  ;;  %p2048_p7 = scmp.ne.s32.totalorder %s291_s19, %s2047_s23 }
  0x1f   : > { %p2056_p11 = scmp.lt.s32.totalorder %s2047_s23, %s2047_s23 }
  0x20   : > { %p2496_p5 = pnand %p1821_p4, %p2935_p1 }
  0x21   : > { %p2057_p12 = por %p2056_p11, %p2055_p10 }
  0x22   : > { %p2038_p6 = pneg %p2496_p5 }
  0x24   : > { %p2050_p8 = pnand %p2048_p7, %p2038_p6 }
  0x26   : > { %p2051_p9 = pneg %p2050_p8 }
  0x28   : > { %p2058_p13 = pnand %p2057_p12, %p2051_p9 }
  0x2a   : > { %2061 = shalt.err (!%p2058_p13)
}
  0x2b   : > { %s2366_s24 = smov 128   ;;  %s2367_s25 = smov 8  }
  0x2c   : > { %s2961_s2 = sld [smem:[#allocation32_spill]]  ;;  %s2073_s21 = scalar_lea.vmem %s304_s22, 2048 }
  0x2d   : > { %p2074_p0 = scmp.ne.s32.totalorder %s304_s22, %s2073_s21  ;;  %p2081_p7 = scmp.lt.s32.totalorder %s304_s22, %s304_s22 }
  0x2e   : > { %p2082_p8 = scmp.lt.s32.totalorder %s2073_s21, %s2073_s21 }
  0x2f   : > { %p2076_p2 = pnand %p2074_p0, %p2038_p6 }
  0x30   : > { %p2083_p10 = por %p2082_p8, %p2081_p7 }
  0x31   : > { %p2077_p4 = pneg %p2076_p2 }
  0x32   : > { %1824 = dma.hbm_to_vmem [thread:$0]  (!%p2496_p5), %s2961_s2, 2048, %s291_s19, [#allocation6], %s2366_s24, %s2366_s24, %s2367_s25  }
  0x33   : > { %p2084_p9 = pnand %p2083_p10, %p2077_p4 }
  0x35   : > { %2087 = shalt.err (!%p2084_p9)
}
  0x36   : > { %s2931_s23 = smov 64   ;;  %s2932_s8 = smov 4  }
  0x37   : > { %s2962_s3 = sld [smem:[#allocation33_spill]]  ;;  %s2370_s25 = smov [#allocation10]  }
  0x38   : > { %s316_s26 = sshll.u32 %s2370_s25, 4  ;;  %s2371_s18 = smov [#allocation11]   ;;  %s317_s26 = int_to_ptr.vmem [resolvable:$true] %s316_s26 }
  0x39   : > { %s329_s2 = sshll.u32 %s2371_s18, 4  ;;  %s2099_s21 = scalar_lea.vmem %s317_s26, 1024  ;;  %s330_s2 = int_to_ptr.vmem [resolvable:$true] %s329_s2 }
  0x3a   : > { %p2100_p11 = scmp.ne.s32.totalorder %s317_s26, %s2099_s21  ;;  %p2107_p0 = scmp.lt.s32.totalorder %s317_s26, %s317_s26 }
  0x3b   : > { %p2108_p2 = scmp.lt.s32.totalorder %s2099_s21, %s2099_s21 }
  0x3c   : > { %p2102_p12 = pnand %p2100_p11, %p2038_p6 }
  0x3d   : > { %1827 = dma.hbm_to_vmem [thread:$0]  (!%p2496_p5), %s2962_s3, 2048, %s304_s22, [#allocation9], %s2931_s23, %s2931_s23, %s2932_s8  }
  0x3e   : > { %p2103_p13 = pneg %p2102_p12  ;;  %p2109_p4 = por %p2108_p2, %p2107_p0 }
  0x40   : > { %p2110_p7 = pnand %p2109_p4, %p2103_p13 }
  0x42   : > { %2113 = shalt.err (!%p2110_p7)
}
  0x43   : > { %s2963_s4 = sld [smem:[#allocation34_spill]]  ;;  %s2125_s24 = scalar_lea.vmem %s330_s2, 1024 }
  0x44   : > { %p2126_p8 = scmp.ne.s32.totalorder %s330_s2, %s2125_s24  ;;  %p2133_p11 = scmp.lt.s32.totalorder %s330_s2, %s330_s2 }
  0x45   : > { %p2134_p12 = scmp.lt.s32.totalorder %s2125_s24, %s2125_s24 }
  0x46   : > { %p2128_p10 = pnand %p2126_p8, %p2038_p6 }
  0x47   : > { %p2135_p13 = por %p2134_p12, %p2133_p11 }
  0x48   : > { %p2129_p9 = pneg %p2128_p10 }
  0x49   : > { %1830 = dma.hbm_to_vmem [thread:$0]  (!%p2496_p5), %s2963_s4, 1024, %s317_s26, [#allocation9], %s2931_s23, %s2931_s23, %s2932_s8  }
  0x4a   : > { %p2136_p0 = pnand %p2135_p13, %p2129_p9 }
  0x4c   : > { %2139 = shalt.err (!%p2136_p0)
}
  0x4d   : > { %s2964_s5 = sld [smem:[#allocation35_spill]]  ;;  %p2934_p6 = scmp.ne.s32.totalorder %s2342_s10, %s2338_s9 }
  0x4e   : > { %p69_p2 = scmp.eq.s32.totalorder %s2362_s15, 0  ;;  %p2933_p4 = scmp.ne.s32.totalorder %s2338_s9, %s2334_s30 }
  0x4f   : > { %p2936_p7 = scmp.lt.s32.totalorder %s2362_s15, 6  ;;  %s346_s26 = sand.u32 1, %s2342_s10  }
  0x50   : > { %p70_p8 = por %p69_p2, %p2934_p6  ;;  %p2561_p10 = por %p2935_p1, %p2933_p4 }
  0x51   : > { %s1601_s22 = sshll.u32 %s346_s26, 5  ;;  %s1679_s19 = sshll.u32 %s2358_s14, 9 }
  0x52   : > { %s2966_s0 = sld [smem:[#allocation31_spill]]  ;;  %s350_s18 = scalar_lea.vmem [#allocation2], %s1601_s22 }
  0x53   : > { %1833 = dma.hbm_to_vmem [thread:$0]  (!%p2496_p5), %s2964_s5, 1024, %s330_s2, [#allocation12], %s2931_s23, %s2931_s23, %s2932_s8  }
  0x54   : > { %s359_s20 = sshll.u32 %s350_s18, 4  ;;  %p2571_p5 = pnand %p2936_p7, %p70_p8  ;;  %s360_s20 = int_to_ptr.vmem [resolvable:$true] %s359_s20 }
  0x55   : > { %s347_s8 = scalar_lea.sflag [#allocation3], %s346_s26  ;;  %s2153_s3 = scalar_lea.vmem %s360_s20, 512 }
  0x56   : > { %p2142_p9 = pneg %p2571_p5  ;;  %p2154_p11 = scmp.ne.s32.totalorder %s360_s20, %s2153_s3 }
  0x57   : > { %s2372_s4 = smov [#allocation2]  }
  0x58   : > { %s358_s2 = scalar_lea.hbm %s2966_s0, %s1679_s19  ;;  %p2156_p12 = pnand %p2154_p11, %p2142_p9 }
  0x59   : > { %s2158_s5 = sshll.u32 %s2372_s4, 4  ;;  %s2159_s5 = int_to_ptr.vmem [resolvable:$false] %s2158_s5 }
  0x5a   : > { %p2157_p13 = pneg %p2156_p12  ;;  %s2160_s19 = scalar_lea.vmem %s2159_s5, 1024 }
  0x5b   : > { %p2161_p0 = scmp.lt.s32.totalorder %s360_s20, %s2159_s5  ;;  %p2162_p4 = scmp.lt.s32.totalorder %s2160_s19, %s2153_s3 }
  0x5d   : > { %p2163_p6 = por %p2162_p4, %p2161_p0 }
  0x5f   : > { %p2164_p1 = pnand %p2163_p6, %p2157_p13 }
  0x61   : > { %2167 = shalt.err (!%p2164_p1)
}
  0x62   : > { %s2968_s22 = smov 4   ;;  %s2969_s24 = smov 64  }
  0x63   : > { %1837 = dma.hbm_to_vmem [thread:$0]  (!%p2571_p5), %s358_s2, 512, %s360_s20, %s347_s8, %s2969_s24, %s2969_s24, %s2968_s22  }
  0x64   : > { %s1594_s3 = sadd.s32 4294967294, %s2362_s15   ;;  %s45_s4 = sadd.s32 1, %s2354_s13 }
  0x65   : > { %s52_s5 = sadd.s32 1, %s2358_s14  ;;  %p46_p1 = scmp.ge.s32.totalorder %s45_s4, 3 }
  0x66   : > { %s84_s23 = smul.u32 3, %s2358_s14  ;;  %s91_s26 = sadd.s32 1, %s2330_s29 }
  0x67   : > { %p98_p6 = scmp.ne.s32.totalorder %s2330_s29, %s2326_s28  ;;  %s3015_s4 = smov (%p46_p1, %s45_s4), 0 }
  0x68   : > { %2970 = sst [smem:[#allocation26_spill]] %s3015_s4  ;;  %s3017_s5 = smov (!%p46_p1, %s52_s5), %s2358_s14 }
  0x69   : > { %s85_s25 = sadd.s32 %s2354_s13, %s84_s23  ;;  %p2595_p4 = por %p98_p6, %p69_p2 }
  0x6a   : > { %p54_p8 = scmp.ge.s32.totalorder %s3017_s5, 2  ;;  %p104_p5 = scmp.ne.s32.totalorder %s2326_s28, %s2322_s27 }
  0x6b   : > { %p239_p9 = scmp.eq.s32.totalorder %s2483_s16, 5  ;;  %p245_p11 = scmp.eq.s32.totalorder %s1594_s3, 5 }
  0x6c   : > { %s3019_s5 = smov (%p54_p8, %s3017_s5), 0  ;;  %p2973_p12 = scmp.eq.s32.totalorder %s2483_s16, 0 }
  0x6d   : > { %2972 = sst [smem:[#allocation27_spill]] %s3019_s5  ;;  %p2610_p2 = por %p239_p9, %p98_p6 }
  0x6e   : > { %p2606_p13 = por %p104_p5, %p2973_p12  ;;  %s56_s18 = ssub.s32 %s2358_s14, %s3019_s5 }
  0x6f   : > { %s2975_s2 = scalar_select %p2610_p2, 1, 0 }
  0x70   : > { %s86_s19 = smul.u32 3, %s3019_s5  ;;  %p59_p0 = scmp.eq.s32.totalorder %s56_s18, 0 }
  0x71   : > { %2976 = sst [smem:[#allocation28_spill]] %s2975_s2  ;;  %p2617_p1 = por %p245_p11, %p104_p5 }
  0x72   : > { %s87_s24 = sadd.s32 %s86_s19, %s3015_s4  ;;  %p2979_p8 = scmp.ne.s32.totalorder %s2342_s10, %s2338_s9 }
  0x73   : > { %s2977_s22 = scalar_select %p2617_p1, 1, 0 }
  0x74   : > { %p2625_p7 = por %p239_p9, %p2979_p8  ;;  %s2982_s23 = sadd.s32 1, %s2342_s10 }
  0x75   : > { %2978 = sst [smem:[#allocation29_spill]] %s2977_s22  ;;  %s88_s13 = ssub.s32 %s85_s25, %s87_s24 }
  0x76   : > { %s2980_s3 = scalar_select %p2625_p7, 1, 0 }
  0x77   : > { %s2632_s0 = scalar_select %p59_p0, %s2342_s10, %s2982_s23  }
  0x78   : > { %2981 = sst [smem:[#allocation30_spill]] %s2980_s3  ;;  %p2983_p6 = scmp.ne.s32.totalorder %s2338_s9, %s2334_s30 }
  0x79   : > { %p89_p2 = scmp.eq.s32.totalorder %s88_s13, 0  ;;  %s369_s18 = sand.u32 1, %s2362_s15  }
  0x7a   : > { %p2637_p12 = por %p245_p11, %p2983_p6  ;;  %s371_s14 = sand.u32 1, %s2330_s29  }
  0x7b   : > { %s2644_s27 = scalar_select %p89_p2, %s2330_s29, %s91_s26  }
  0x7c   : > { %s2984_s5 = scalar_select %p2637_p12, 1, 0 }
  0x7d   : > { %s1604_s19 = sshll.u32 %s371_s14, 1  ;;  %s1680_s4 = sshll.u32 %s85_s25, 5 }
  0x7e   : > { %s381_s3 = scalar_lea.hbm %s2922_s1, %s1680_s4  ;;  %s373_s2 = scalar_lea.vmem [#allocation5], %s1604_s19 }
  0x7f   : > { %s383_s23 = sshll.u32 %s373_s2, 4  ;;  %p2985_p5 = scmp.lt.s32.totalorder %s2362_s15, 6  ;;  %s384_s23 = int_to_ptr.vmem [resolvable:$true] %s383_s23 }
  0x80   : > { %s370_s13 = scalar_lea.sflag [#allocation6], %s369_s18  ;;  %s2181_s26 = scalar_lea.vmem %s384_s23, 32 }
  0x81   : > { %p2653_p9 = pnand %p2985_p5, %p2595_p4  ;;  %p2182_p2 = scmp.ne.s32.totalorder %s384_s23, %s2181_s26 }
  0x82   : > { %s2373_s14 = smov [#allocation5]  }
  0x83   : > { %p2170_p11 = pneg %p2653_p9  ;;  %s2186_s7 = sshll.u32 %s2373_s14, 4  ;;  %s2187_s7 = int_to_ptr.vmem [resolvable:$false] %s2186_s7 }
  0x84   : > { %s2188_s4 = scalar_lea.vmem %s2187_s7, 64  ;;  %p2189_p6 = scmp.lt.s32.totalorder %s384_s23, %s2187_s7 }
  0x85   : > { %p2184_p0 = pnand %p2182_p2, %p2170_p11  ;;  %p2190_p12 = scmp.lt.s32.totalorder %s2188_s4, %s2181_s26 }
  0x87   : > { %p2185_p8 = pneg %p2184_p0  ;;  %p2191_p1 = por %p2190_p12, %p2189_p6 }
  0x89   : > { %p2192_p4 = pnand %p2191_p1, %p2185_p8 }
  0x8b   : > { %2195 = shalt.err (!%p2192_p4)
}
  0x8c   : > { %1840 = dma.hbm_to_vmem [thread:$0]  (!%p2653_p9), %s381_s3, 32, %s384_s23, %s370_s13  }
  0x8d   : > { %392 = sbr.rel (%p2488_p3) target bundleno = 1247 (0x4df), region = 48  ;;  %s2664_s25 = sand.u32 (!%p2488_p3), 1, %s2338_s9  }
  0x8e   : > { %s1608_s8 = sshll.u32 (!%p2488_p3), %s2664_s25, 5  ;;  %s395_s2 = scalar_lea.sflag (!%p2488_p3), [#allocation3], %s2664_s25 }
  0x8f   : > { %s2668_s22 = scalar_lea.vmem (!%p2488_p3), [#allocation2], %s1608_s8 }
  0x92   : > { %2293 = dma.done.wait (%p2561_p10), %s395_s2, 512  }
  0x93   : > { %2295 = vsyncadd (%p2561_p10), %s395_s2, 4294966784  ;;  %s403_s17 = sand.u32 1, %s2483_s16   ;;  %s2676_s3 = sand.u32 1, %s2326_s28  }
  0x94   : > { %s1609_s18 = sshll.u32 %s2676_s3, 1  ;;  %s404_s19 = scalar_lea.sflag [#allocation6], %s403_s17 }
  0x95   : > { %s2679_s23 = scalar_lea.vmem [#allocation5], %s1609_s18 }
  0x96   : > { %2297 = dma.done.wait (%p2606_p13), %s404_s19, 32  }
  0x97   : > { %2299 = vsyncadd (%p2606_p13), %s404_s19, 4294967264  ;;  %p2987_p3 = scmp.eq.s32.totalorder %s2483_s16, 0 }
  0x99   : > { %2301 = dma.done.wait (%p2987_p3), [#allocation6], 2048   ;;  %p2988_p10 = pmov %p2987_p3 }
  0x9a   : > { %p2989_p1 = pmov %p2987_p3 }
  0x9b   : > { %2303 = vsyncadd (%p2988_p10), [#allocation6], 4294965248 }
  0x9c   : > { %2305 = dma.done.wait (%p2989_p1), [#allocation9], 3072   ;;  %p2990_p12 = pmov %p2989_p1 }
  0x9d   : > { %p2991_p5 = pmov %p2989_p1 }
  0x9e   : > { %2307 = vsyncadd (%p2990_p12), [#allocation9], 4294964224 }
  0x9f   : > { %2309 = dma.done.wait (%p2991_p5), [#allocation12], 1024   ;;  %p2992_p9 = pmov %p2989_p1 }
  0xa0   : > { %s1614_s21 = sshll.u32 %s2676_s3, 6  ;;  %s1795_s20 = smul.u32 6, %s2664_s25 }
  0xa1   : > { %2311 = vsyncadd (%p2992_p9), [#allocation12], 4294966272  ;;  %p475_p13 = scmp.eq.s32.totalorder %s2346_s11, 0  ;;  %s2700_s24 = scalar_lea.vmem [#allocation13], %s1614_s21 }
  0xa2   : > { %s2702_s13 = scalar_lea.vmem [#allocation14], %s1795_s20  ;;  %v2374_v0 = vmov (%p475_p13), 0.0  }
  0xa3   : > { %479 = sbr.rel (!%p475_p13) target bundleno = 168 (0xa8), region = 76  ;;  %480 = vst [vmem:[%s2702_s13] sm:$0x3] (%p475_p13), %v2374_v0  ;;  %481 = vst [vmem:[%s2702_s13 + $0x2] sm:$0x3] (%p475_p13), %v2374_v0 }
  0xa4   : > { %482 = vst [vmem:[%s2702_s13 + $0x4] sm:$0x3] (%p475_p13), %v2374_v0 }
  0xa8 PF: > { %v1960_v1 = vld [vmem:[#allocation7 + $0x74] ss:$8 sps:$4 sm:$0xff]   ;;  %v1962_v2 = vld [vmem:[#allocation7 + $0x70] ss:$8 sps:$4 sm:$0xff]   ;;  %v2375_v3 = vmov 0   ;;  %v1992_v18 = vld [vmem:[#allocation8 + $0x68] sm:$0xff]   ;;  %v514_v39 = vlaneseq }
  0xa9   : > { %660 = vmatprep.mubr.bf16.mxu0 %v2375_v3  ;;  %628 = vmatprep.subr.bf16.mxu0 %v1960_v1  ;;  %v1963_v4 = vld [vmem:[#allocation7 + $0x64] ss:$8 sps:$4 sm:$0xff]   ;;  %v1965_v5 = vld [vmem:[#allocation7 + $0x60] ss:$8 sps:$4 sm:$0xff]   ;;  %v1966_v6 = vld [vmem:[#allocation7 + $0x54] ss:$8 sps:$4 sm:$0xff]  }
  0xaa   : > { %629 = vmatpush1.bf16.msra.mxu0 %v1962_v2  ;;  %v1968_v7 = vld [vmem:[#allocation7 + $0x50] ss:$8 sps:$4 sm:$0xff]   ;;  %v1969_v8 = vld [vmem:[#allocation7 + $0x44] ss:$8 sps:$4 sm:$0xff]   ;;  %v1971_v9 = vld [vmem:[#allocation7 + $0x40] ss:$8 sps:$4 sm:$0xff]  }
  0xab   : > { %630 = vmatprep.subr.bf16.mxu0 %v1963_v4  ;;  %v1972_v10 = vld [vmem:[#allocation7 + $0x34] ss:$8 sps:$4 sm:$0xff]   ;;  %v1974_v11 = vld [vmem:[#allocation7 + $0x30] ss:$8 sps:$4 sm:$0xff]   ;;  %v1975_v12 = vld [vmem:[#allocation7 + $0x24] ss:$8 sps:$4 sm:$0xff]  }
  0xac   : > { %v1988_v13 = vld [vmem:[#allocation8 + $0x78] sm:$0xff]   ;;  %v1977_v15 = vld [vmem:[#allocation7 + $0x20] ss:$8 sps:$4 sm:$0xff]   ;;  %v1990_v16 = vld [vmem:[#allocation8 + $0x70] sm:$0xff]   ;;  %v515_v40 = vshrl.u32 %v514_v39, 7  ;;  %s2993_s19 = sld [smem:[#allocation28_spill]] }
  0xad   : > { %v1989_v14 = vld [vmem:[#allocation8 + $0x38] sm:$0xff]   ;;  %1683 = vmatprep.subr.bf16.mxu1 %v1988_v13  ;;  %v1991_v17 = vld [vmem:[#allocation8 + $0x30] sm:$0xff]   ;;  %v1993_v21 = vld [vmem:[#allocation8 + $0x28] sm:$0xff]   ;;  %s1387_s21 = sshll.u32 %s2700_s24, 4  ;;  %s2994_s7 = sld [smem:[#allocation36_spill]]  ;;  %s2802_s21 = int_to_ptr.vmem [resolvable:$true] %s1387_s21 }
  0xae   : > { %631 = vmatpush1.bf16.msra.mxu0 %v1965_v5  ;;  %1684 = vmatpush3.bf16.msra.mxu1 %v1989_v14  ;;  %v1978_v19 = vld [vmem:[#allocation7 + $0x14] ss:$8 sps:$4 sm:$0xff]   ;;  %v1980_v20 = vld [vmem:[#allocation7 + $0x10] ss:$8 sps:$4 sm:$0xff]   ;;  %v1981_v22 = vld [vmem:[#allocation7 + $0x4] ss:$8 sps:$4 sm:$0xff]  }
  0xaf   : > { %632 = vmatprep.subr.bf16.mxu0 %v1966_v6  ;;  %1685 = vmatprep.subr.bf16.mxu1 %v1990_v16  ;;  %v1994_v23 = vld [vmem:[#allocation8 + $0x60] sm:$0xff]   ;;  %v1996_v26 = vld [vmem:[#allocation8 + $0x58] sm:$0xff]   ;;  %v1986_v29 = vld [vmem:[%s2668_s22 + $0x10] sm:$0xff]   ;;  %v516_v41 = vsub.s32 0, %v515_v40  ;;  %v520_v43 = vsub.s32 1, %v515_v40  ;;  %s1365_s8 = scalar_lea.sflag [#allocation4], %s2676_s3 }
  0xb0   : > { %v1995_v24 = vld [vmem:[#allocation8 + $0x20] sm:$0xff]   ;;  %v1987_v30 = vld [vmem:[%s2668_s22 + $0x18] sm:$0xff]   ;;  %v2000_v34 = vld [vmem:[#allocation8 + $0x48] sm:$0xff]   ;;  %s2196_s2 = scalar_lea.vmem %s2802_s21, 1024 }
  0xb1   : > { %v1983_v25 = vld [vmem:[#allocation7] ss:$8 sps:$4 sm:$0xff]   ;;  %v1997_v31 = vld [vmem:[#allocation8 + $0x18] sm:$0xff]   ;;  %v1998_v32 = vld [vmem:[#allocation8 + $0x50] sm:$0xff]   ;;  %p2197_p11 = scmp.ne.s32.totalorder %s2802_s21, %s2196_s2 }
  0xb2   : > { %633 = vmatpush1.bf16.msra.mxu0 %v1968_v7  ;;  %1686 = vmatpush3.bf16.msra.mxu1 %v1991_v17  ;;  %v1984_v27 = vld [vmem:[%s2668_s22] sm:$0xff]   ;;  %v1985_v28 = vld [vmem:[%s2668_s22 + $0x8] sm:$0xff]   ;;  %v1999_v33 = vld [vmem:[#allocation8 + $0x10] sm:$0xff]   ;;  %p2995_p2 = scmp.ne.s32.totalorder %s2993_s19, 0  ;;  %s2376_s22 = smov [#allocation13]  }
  0xb3   : > { %634 = vmatprep.subr.bf16.mxu0 %v1969_v8  ;;  %1687 = vmatprep.subr.bf16.mxu1 %v1992_v18  ;;  %v2001_v35 = vld [vmem:[#allocation8 + $0x8] sm:$0xff]   ;;  %v2002_v36 = vld [vmem:[#allocation8 + $0x40] sm:$0xff]   ;;  %v2004_v38 = vld [vmem:[#allocation10 + $0x38] sm:$0xff]  }
  0xb4   : > { %v2003_v37 = vld [vmem:[#allocation8] sm:$0xff]   ;;  %v491_v42 = vld [vmem:[%s2679_s23] sm:$0x3]  ;;  %v2006_v39 = vld [vmem:[#allocation10 + $0x28] sm:$0xff]   ;;  %s1377_s23 = smul.u32 3, %s2350_s12  ;;  %p2198_p0 = pnand %p2197_p11, %p2995_p2 }
  0xb5   : > { %v517_v45 = vrot.slane %v491_v42, %v516_v41  ;;  %v521_v47 = vrot.slane %v491_v42, %v520_v43  ;;  %v2007_v40 = vld [vmem:[#allocation10 + $0x20] sm:$0xff]   ;;  %v2008_v41 = vld [vmem:[#allocation10 + $0x18] sm:$0xff]   ;;  %v2009_v42 = vld [vmem:[#allocation10 + $0x10] sm:$0xff]  }
  0xb6   : > { %635 = vmatpush1.bf16.msra.mxu0 %v1971_v9  ;;  %1688 = vmatpush3.bf16.msra.mxu1 %v1993_v21  ;;  %v2010_v43 = vld [vmem:[#allocation10 + $0x8] sm:$0xff]   ;;  %s1378_s20 = sadd.s32 %s2346_s11, %s1377_s23  ;;  %p2199_p8 = pneg %p2198_p0 }
  0xb7   : > { %636 = vmatprep.subr.bf16.mxu0 %v1972_v10  ;;  %1689 = vmatprep.subr.bf16.mxu1 %v1994_v23  ;;  %s1682_s16 = sshll.u32 %s1378_s20, 10 }
  0xb8   : > { %s2807_s4 = scalar_lea.hbm %s2994_s7, %s1682_s16 }
  0xba   : > { %637 = vmatpush1.bf16.msra.mxu0 %v1974_v11  ;;  %1690 = vmatpush3.bf16.msra.mxu1 %v1995_v24 }
  0xbb   : > { %638 = vmatprep.subr.bf16.mxu0 %v1975_v12  ;;  %1691 = vmatprep.subr.bf16.mxu1 %v1996_v26 }
  0xbe   : > { %639 = vmatpush1.bf16.msra.mxu0 %v1977_v15  ;;  %1692 = vmatpush3.bf16.msra.mxu1 %v1997_v31 }
  0xbf   : > { %640 = vmatprep.subr.bf16.mxu0 %v1978_v19  ;;  %1693 = vmatprep.subr.bf16.mxu1 %v1998_v32 }
  0xc2   : > { %641 = vmatpush1.bf16.msra.mxu0 %v1980_v20  ;;  %1694 = vmatpush3.bf16.msra.mxu1 %v1999_v33 }
  0xc3   : > { %642 = vmatprep.subr.bf16.mxu0 %v1981_v22  ;;  %1695 = vmatprep.subr.bf16.mxu1 %v2000_v34 }
  0xc6   : > { %643 = vmatpush1.bf16.msra.mxu0 %v1983_v25  ;;  %1696 = vmatpush3.bf16.msra.mxu1 %v2001_v35 }
  0xc7   : > { %1697 = vmatprep.subr.bf16.mxu1 %v2002_v36  ;;  %1747 = vmatprep.subr.bf16.mxu0 %v2004_v38 }
  0xc9   : > { %661 = vmatmul.mubr.bf16.vlgmr.msra.gmra.mxu0 %v1984_v27 }
  0xca   : > { %670 = vmatprep.mubr.bf16.mxu0 %v2375_v3  ;;  %1698 = vmatpush3.bf16.msra.mxu1 %v2003_v37 }
  0xcb   : > { %1748 = vmatpush3.bf16.msra.mxu0 %v2004_v38  ;;  %v2005_v38 = vld [vmem:[#allocation10 + $0x30] sm:$0xff]  }
  0xcc   : > { %1749 = vmatprep.subr.bf16.mxu0 %v2005_v38 }
  0xcf   : > { %1750 = vmatpush3.bf16.msra.mxu0 %v2005_v38 }
  0xd0   : > { %1751 = vmatprep.subr.bf16.mxu0 %v2006_v39 }
  0xd1   : > { %671 = vmatmul.mubr.bf16.gmra.mxu0 %v1985_v28 }
  0xd2   : > { %680 = vmatprep.mubr.bf16.mxu0 %v2375_v3 }
  0xd3   : > { %1752 = vmatpush3.bf16.msra.mxu0 %v2006_v39 }
  0xd4   : > { %1753 = vmatprep.subr.bf16.mxu0 %v2007_v40 }
  0xd7   : > { %1754 = vmatpush3.bf16.msra.mxu0 %v2007_v40 }
  0xd8   : > { %1755 = vmatprep.subr.bf16.mxu0 %v2008_v41 }
  0xd9   : > { %681 = vmatmul.mubr.bf16.gmra.mxu0 %v1986_v29 }
  0xda   : > { %690 = vmatprep.mubr.bf16.mxu0 %v2375_v3 }
  0xdb   : > { %1756 = vmatpush3.bf16.msra.mxu0 %v2008_v41 }
  0xdc   : > { %1757 = vmatprep.subr.bf16.mxu0 %v2009_v42 }
  0xdf   : > { %1758 = vmatpush3.bf16.msra.mxu0 %v2009_v42 }
  0xe0   : > { %1759 = vmatprep.subr.bf16.mxu0 %v2010_v43 }
  0xe1   : > { %691 = vmatmul.mubr.bf16.gmra.mxu0 %v1987_v30 }
  0xe3   : > { %1760 = vmatpush3.bf16.msra.mxu0 %v2010_v43 }
 0x189   : > { %v662_v44 = vpop.f32.mrf.mxu0 }
 0x18a   : > { %v663_v49 = vadd.f32 %v662_v44, %v517_v45  ;;  %v2011_v44 = vld [vmem:[#allocation10] sm:$0xff]  }
 0x18b   : > { %v664_v46 = vpop.f32.mrf.mxu0  ;;  %1761 = vmatprep.subr.bf16.mxu0 %v2011_v44 }
 0x18c   : > { %v665_v52 = vadd.f32 %v664_v46, %v521_v47  ;;  %1762 = vmatpush3.bf16.msra.mxu0 %v2011_v44  ;;  %v2013_v46 = vld [vmem:[#allocation11 + $0x30] sm:$0xff]  }
 0x18d   : > { %v666_v48 = vpop.f32.mrf.mxu0 }
 0x18e   : > { %v667_v50 = vadd.f32 %v666_v48, %v517_v45  ;;  %v2015_v48 = vld [vmem:[#allocation11 + $0x20] sm:$0xff]  }
 0x18f   : > { %v668_v51 = vpop.f32.mrf.mxu0 }
 0x190   : > { %v701_v53 = vpack.c.bf16 %v667_v50, %v663_v49  ;;  %v669_v54 = vadd.f32 %v668_v51, %v521_v47  ;;  %v2016_v49 = vld [vmem:[#allocation11 + $0x18] sm:$0xff]  }
 0x191   : > { %v672_v55 = vpop.f32.mrf.mxu0  ;;  %v2715_v51 = vld [vmem:[%s2927_s6] ss:$0 sm:$0xff] }
 0x192   : > { %v702_v56 = vpack.c.bf16 %v669_v54, %v665_v52  ;;  %v717_v58 = vmul.bf16 1045249613, %v701_v53  ;;  %vm709_vm1 = vcmp.ge.bf16.partialorder %v701_v53, 0  ;;  %v673_v61 = vadd.f32 %v672_v55, %v517_v45 }
 0x193   : > { %v674_v57 = vpop.f32.mrf.mxu0 }
 0x194   : > { %vm710_vm0 = vcmp.ge.bf16.partialorder %v702_v56, 0  ;;  %v718_v59 = vmul.bf16 1045249613, %v702_v56  ;;  %v725_v1 = vsel %vm709_vm1, %v701_v53, %v717_v58  ;;  %v675_v2 = vadd.f32 %v674_v57, %v521_v47  ;;  %v2721_v57 = vld [vmem:[%s2927_s6 + $0x1] ss:$0 sm:$0xff] }
 0x195   : > { %v676_v60 = vpop.f32.mrf.mxu0 }
 0x196   : > { %v677_v62 = vadd.f32 %v676_v60, %v517_v45  ;;  %v726_v63 = vsel %vm710_vm0, %v702_v56, %v718_v59 }
 0x197   : > { %v678_v0 = vpop.f32.mrf.mxu0  ;;  %897 = vmatprep.mubr.bf16.mxu1 %v726_v63  ;;  %v2727_v63 = vld [vmem:[%s2927_s6 + $0x2] ss:$0 sm:$0xff] }
 0x198   : > { %v703_v3 = vpack.c.bf16 %v677_v62, %v673_v61  ;;  %v679_v4 = vadd.f32 %v678_v0, %v521_v47  ;;  %898 = vmatmul.mubr.bf16.vlgmr.msra.gmra.mxu1 %v725_v1 }
 0x199   : > { %v682_v5 = vpop.f32.mrf.mxu0 }
 0x19a   : > { %v704_v6 = vpack.c.bf16 %v679_v4, %v675_v2  ;;  %v719_v8 = vmul.bf16 1045249613, %v703_v3  ;;  %vm711_vm3 = vcmp.ge.bf16.partialorder %v703_v3, 0  ;;  %v683_v11 = vadd.f32 %v682_v5, %v517_v45 }
 0x19b   : > { %v684_v7 = vpop.f32.mrf.mxu0 }
 0x19c   : > { %vm712_vm2 = vcmp.ge.bf16.partialorder %v704_v6, 0  ;;  %v720_v9 = vmul.bf16 1045249613, %v704_v6  ;;  %v727_v15 = vsel %vm711_vm3, %v703_v3, %v719_v8  ;;  %v685_v16 = vadd.f32 %v684_v7, %v521_v47 }
 0x19d   : > { %v686_v10 = vpop.f32.mrf.mxu0 }
 0x19e   : > { %v687_v12 = vadd.f32 %v686_v10, %v517_v45  ;;  %v728_v13 = vsel %vm712_vm2, %v704_v6, %v720_v9 }
 0x19f   : > { %v688_v14 = vpop.f32.mrf.mxu0  ;;  %905 = vmatprep.mubr.bf16.mxu1 %v728_v13 }
 0x1a0   : > { %v705_v17 = vpack.c.bf16 %v687_v12, %v683_v11  ;;  %v689_v18 = vadd.f32 %v688_v14, %v521_v47  ;;  %906 = vmatmul.mubr.bf16.gmra.mxu1 %v727_v15 }
 0x1a1   : > { %v692_v19 = vpop.f32.mrf.mxu0 }
 0x1a2   : > { %v706_v20 = vpack.c.bf16 %v689_v18, %v685_v16  ;;  %v721_v22 = vmul.bf16 1045249613, %v705_v17  ;;  %vm713_vm5 = vcmp.ge.bf16.partialorder %v705_v17, 0  ;;  %v693_v25 = vadd.f32 %v692_v19, %v517_v45 }
 0x1a3   : > { %v694_v21 = vpop.f32.mrf.mxu0 }
 0x1a4   : > { %vm714_vm4 = vcmp.ge.bf16.partialorder %v706_v20, 0  ;;  %v722_v23 = vmul.bf16 1045249613, %v706_v20  ;;  %v729_v29 = vsel %vm713_vm5, %v705_v17, %v721_v22  ;;  %v695_v30 = vadd.f32 %v694_v21, %v521_v47 }
 0x1a5   : > { %v696_v24 = vpop.f32.mrf.mxu0 }
 0x1a6   : > { %v697_v26 = vadd.f32 %v696_v24, %v517_v45  ;;  %v730_v27 = vsel %vm714_vm4, %v706_v20, %v722_v23  ;;  %v2012_v45 = vld [vmem:[#allocation11 + $0x38] sm:$0xff]  }
 0x1a7   : > { %v698_v28 = vpop.f32.mrf.mxu0  ;;  %913 = vmatprep.mubr.bf16.mxu1 %v730_v27  ;;  %1771 = vmatprep.subr.bf16.mxu1 %v2012_v45 }
 0x1a8   : > { %v707_v31 = vpack.c.bf16 %v697_v26, %v693_v25  ;;  %v699_v32 = vadd.f32 %v698_v28, %v521_v47  ;;  %914 = vmatmul.mubr.bf16.gmra.mxu1 %v729_v29  ;;  %v2014_v47 = vld [vmem:[#allocation11 + $0x28] sm:$0xff]  }
 0x1a9   : > { %1772 = vmatpush3.bf16.msra.mxu1 %v2012_v45 }
 0x1aa   : > { %v708_v33 = vpack.c.bf16 %v699_v32, %v695_v30  ;;  %v723_v34 = vmul.bf16 1045249613, %v707_v31  ;;  %vm715_vm7 = vcmp.ge.bf16.partialorder %v707_v31, 0  ;;  %1773 = vmatprep.subr.bf16.mxu1 %v2013_v46 }
 0x1ac   : > { %vm716_vm6 = vcmp.ge.bf16.partialorder %v708_v33, 0  ;;  %v724_v35 = vmul.bf16 1045249613, %v708_v33  ;;  %v731_v37 = vsel %vm715_vm7, %v707_v31, %v723_v34 }
 0x1ad   : > { %1774 = vmatpush3.bf16.msra.mxu1 %v2013_v46 }
 0x1ae   : > { %v732_v36 = vsel %vm716_vm6, %v708_v33, %v724_v35  ;;  %1775 = vmatprep.subr.bf16.mxu1 %v2014_v47 }
 0x1af   : > { %921 = vmatprep.mubr.bf16.mxu1 %v732_v36 }
 0x1b0   : > { %922 = vmatmul.mubr.bf16.gmra.mxu1 %v731_v37 }
 0x1b1   : > { %1776 = vmatpush3.bf16.msra.mxu1 %v2014_v47 }
 0x1b2   : > { %1777 = vmatprep.subr.bf16.mxu1 %v2015_v48 }
 0x1b5   : > { %1778 = vmatpush3.bf16.msra.mxu1 %v2015_v48 }
 0x1b6   : > { %1779 = vmatprep.subr.bf16.mxu1 %v2016_v49 }
 0x1b9   : > { %1780 = vmatpush3.bf16.msra.mxu1 %v2016_v49 }
 0x258   : > { %v1699_v50 = vpop.f32.mrf.mxu1 }
 0x25a   : > { %v1700_v52 = vpop.f32.mrf.mxu1 }
 0x25b   : > { %v1701_v53 = vadd.f32 %v1700_v52, %v1699_v50 }
 0x25c   : > { %v1702_v54 = vpop.f32.mrf.mxu1 }
 0x25d   : > { %v900_v55 = vadd.f32 %v1701_v53, %v2715_v51 }
 0x25e   : > { %v1703_v56 = vpop.f32.mrf.mxu1 }
 0x25f   : > { %vm930_vm8 = vcmp.ge.f32.partialorder %v900_v55, 0.0  ;;  %v938_v58 = vmul.f32 0.2, %v900_v55  ;;  %v1704_v59 = vadd.f32 %v1703_v56, %v1702_v54 }
 0x260   : > { %v1705_v60 = vpop.f32.mrf.mxu1 }
 0x261   : > { %v946_v61 = vsel %vm930_vm8, %v900_v55, %v938_v58  ;;  %v903_v62 = vadd.f32 %v1704_v59, %v2715_v51 }
 0x262   : > { %v958_v0 = vmul.f32 %v2721_v57, %v946_v61  ;;  %v1706_v1 = vpop.f32.mrf.mxu1 }
 0x263   : > { %vm931_vm9 = vcmp.ge.f32.partialorder %v903_v62, 0.0  ;;  %v939_v2 = vmul.f32 0.2, %v903_v62  ;;  %v1707_v3 = vadd.f32 %v1706_v1, %v1705_v60 }
 0x264   : > { %v1708_v4 = vpop.f32.mrf.mxu1  ;;  %v970_v5 = vadd.f32 %v2727_v63, %v958_v0 }
 0x265   : > { %v947_v6 = vsel %vm931_vm9, %v903_v62, %v939_v2  ;;  %v908_v7 = vadd.f32 %v1707_v3, %v2715_v51  ;;  %v2017_v2 = vld [vmem:[#allocation11 + $0x10] sm:$0xff]   ;;  %v2018_v3 = vld [vmem:[#allocation11 + $0x8] sm:$0xff]  }
 0x266   : > { %v959_v8 = vmul.f32 %v2721_v57, %v947_v6  ;;  %v1709_v9 = vpop.f32.mrf.mxu1  ;;  %1312 = vst [vmem:[%s2700_s24] sm:$0xff] %v970_v5  ;;  %1781 = vmatprep.subr.bf16.mxu1 %v2017_v2 }
 0x267   : > { %vm932_vm10 = vcmp.ge.f32.partialorder %v908_v7, 0.0  ;;  %v940_v10 = vmul.f32 0.2, %v908_v7  ;;  %v1710_v11 = vadd.f32 %v1709_v9, %v1708_v4  ;;  %1782 = vmatpush3.bf16.msra.mxu1 %v2017_v2  ;;  %v2019_v4 = vld [vmem:[#allocation11] sm:$0xff]  }
 0x268   : > { %v1711_v12 = vpop.f32.mrf.mxu1  ;;  %v971_v13 = vadd.f32 %v2727_v63, %v959_v8  ;;  %1783 = vmatprep.subr.bf16.mxu1 %v2018_v3 }
 0x269   : > { %v948_v14 = vsel %vm932_vm10, %v908_v7, %v940_v10  ;;  %v911_v15 = vadd.f32 %v1710_v11, %v2715_v51 }
 0x26a   : > { %v960_v16 = vmul.f32 %v2721_v57, %v948_v14  ;;  %v1712_v17 = vpop.f32.mrf.mxu1  ;;  %v978_v18 = vpack.c.bf16 %v971_v13, %v970_v5  ;;  %1313 = vst [vmem:[%s2700_s24 + $0x8] sm:$0xff] %v971_v13  ;;  %v1320_v19 = vadd.f32 %v971_v13, %v970_v5 }
 0x26b   : > { %vm933_vm11 = vcmp.ge.f32.partialorder %v911_v15, 0.0  ;;  %v941_v20 = vmul.f32 0.2, %v911_v15  ;;  %v1713_v21 = vadd.f32 %v1712_v17, %v1711_v12  ;;  %1784 = vmatpush3.bf16.msra.mxu1 %v2018_v3 }
 0x26c   : > { %v972_v22 = vadd.f32 %v2727_v63, %v960_v16  ;;  %v1714_v23 = vpop.f32.mrf.mxu1  ;;  %1763 = vmatprep.mubr.bf16.mxu0 %v978_v18  ;;  %1785 = vmatprep.subr.bf16.mxu1 %v2019_v4 }
 0x26d   : > { %v949_v24 = vsel %vm933_vm11, %v911_v15, %v941_v20  ;;  %v916_v25 = vadd.f32 %v1713_v21, %v2715_v51 }
 0x26e   : > { %1314 = vst [vmem:[%s2700_s24 + $0x10] sm:$0xff] %v972_v22  ;;  %v961_v26 = vmul.f32 %v2721_v57, %v949_v24  ;;  %v1321_v27 = vadd.f32 %v1320_v19, %v972_v22  ;;  %v1715_v28 = vpop.f32.mrf.mxu1 }
 0x26f   : > { %vm934_vm12 = vcmp.ge.f32.partialorder %v916_v25, 0.0  ;;  %v942_v29 = vmul.f32 0.2, %v916_v25  ;;  %v1716_v30 = vadd.f32 %v1715_v28, %v1714_v23  ;;  %1786 = vmatpush3.bf16.msra.mxu1 %v2019_v4 }
 0x270   : > { %v973_v31 = vadd.f32 %v2727_v63, %v961_v26  ;;  %v1717_v32 = vpop.f32.mrf.mxu1 }
 0x271   : > { %v950_v33 = vsel %vm934_vm12, %v916_v25, %v942_v29  ;;  %v919_v34 = vadd.f32 %v1716_v30, %v2715_v51 }
 0x272   : > { %1315 = vst [vmem:[%s2700_s24 + $0x18] sm:$0xff] %v973_v31  ;;  %v962_v35 = vmul.f32 %v2721_v57, %v950_v33  ;;  %v1718_v36 = vpop.f32.mrf.mxu1  ;;  %v979_v37 = vpack.c.bf16 %v973_v31, %v972_v22  ;;  %v1322_v38 = vadd.f32 %v1321_v27, %v973_v31 }
 0x273   : > { %vm935_vm13 = vcmp.ge.f32.partialorder %v919_v34, 0.0  ;;  %v943_v39 = vmul.f32 0.2, %v919_v34  ;;  %v1719_v40 = vadd.f32 %v1718_v36, %v1717_v32  ;;  %v1664_v32 = vld [vmem:[%s2927_s6 + $0x4] ss:$0 sm:$0xff] }
 0x274   : > { %v1720_v41 = vpop.f32.mrf.mxu1  ;;  %1764 = vmatmul.mubr.bf16.vlgmr.msra.gmra.mxu0 %v979_v37  ;;  %v974_v42 = vadd.f32 %v2727_v63, %v962_v35 }
 0x275   : > { %v951_v43 = vsel %vm935_vm13, %v919_v34, %v943_v39  ;;  %v924_v44 = vadd.f32 %v1719_v40, %v2715_v51 }
 0x276   : > { %v963_v45 = vmul.f32 %v2721_v57, %v951_v43  ;;  %v1721_v46 = vpop.f32.mrf.mxu1  ;;  %1316 = vst [vmem:[%s2700_s24 + $0x20] sm:$0xff] %v974_v42  ;;  %v1323_v47 = vadd.f32 %v1322_v38, %v974_v42 }
 0x277   : > { %vm936_vm14 = vcmp.ge.f32.partialorder %v924_v44, 0.0  ;;  %v944_v48 = vmul.f32 0.2, %v924_v44  ;;  %v1722_v49 = vadd.f32 %v1721_v46, %v1720_v41 }
 0x278   : > { %v975_v50 = vadd.f32 %v2727_v63, %v963_v45 }
 0x279   : > { %v952_v52 = vsel %vm936_vm14, %v924_v44, %v944_v48  ;;  %v927_v53 = vadd.f32 %v1722_v49, %v2715_v51 }
 0x27a   : > { %v964_v54 = vmul.f32 %v2721_v57, %v952_v52  ;;  %v980_v55 = vpack.c.bf16 %v975_v50, %v974_v42  ;;  %1317 = vst [vmem:[%s2700_s24 + $0x28] sm:$0xff] %v975_v50  ;;  %v1324_v56 = vadd.f32 %v1323_v47, %v975_v50 }
 0x27b   : > { %vm937_vm15 = vcmp.ge.f32.partialorder %v927_v53, 0.0  ;;  %v945_v58 = vmul.f32 0.2, %v927_v53 }
 0x27c   : > { %1767 = vmatprep.mubr.bf16.mxu0 %v980_v55  ;;  %v976_v59 = vadd.f32 %v2727_v63, %v964_v54 }
 0x27d   : > { %v953_v60 = vsel %vm937_vm15, %v927_v53, %v945_v58 }
 0x27e   : > { %v965_v61 = vmul.f32 %v2721_v57, %v953_v60  ;;  %1318 = vst [vmem:[%s2700_s24 + $0x30] sm:$0xff] %v976_v59  ;;  %v1325_v62 = vadd.f32 %v1324_v56, %v976_v59  ;;  %v1655_v57 = vld [vmem:[%s2927_s6 + $0x3] ss:$0 sm:$0xff] }
 0x280   : > { %v977_v0 = vadd.f32 %v2727_v63, %v965_v61 }
 0x282   : > { %v981_v1 = vpack.c.bf16 %v977_v0, %v976_v59  ;;  %1319 = vst [vmem:[%s2700_s24 + $0x38] sm:$0xff] %v977_v0  ;;  %v2759_v51 = vadd.f32 %v1325_v62, %v977_v0  ;;  %s2200_s24 = sshll.u32 %s2376_s22, 4  ;;  %s2201_s24 = int_to_ptr.vmem [resolvable:$false] %s2200_s24 }
 0x283   : > { %s2202_s17 = scalar_lea.vmem %s2201_s24, 2048  ;;  %p2203_p6 = scmp.lt.s32.totalorder %s2802_s21, %s2201_s24 }
 0x284   : > { %1768 = vmatmul.mubr.bf16.gmra.mxu0 %v981_v1  ;;  %p2204_p4 = scmp.lt.s32.totalorder %s2202_s17, %s2196_s2 }
 0x286   : > { %p2205_p3 = por %p2204_p4, %p2203_p6 }
 0x288   : > { %p2206_p10 = pnand %p2205_p3, %p2199_p8 }
 0x334   : > { %v1765_v5 = vpop.f32.mrf.mxu0 }
 0x335   : > { %v1093_v7 = vadd.f32 %v1765_v5, %v1655_v57 }
 0x336   : > { %v1084_v63 = vpop.f32.mrf.mxu0 }
 0x337   : > { %v1085_v10 = vadd.f32 %v1655_v57, %v1084_v63 }
 0x338   : > { %v1766_v6 = vpop.f32.mrf.mxu0 }
 0x339   : > { %v1096_v8 = vadd.f32 %v1766_v6, %v1655_v57 }
 0x33a   : > { %v1087_v9 = vpop.f32.mrf.mxu0 }
 0x33b   : > { %v1116_v11 = vpack.c.bf16 %v1096_v8, %v1093_v7  ;;  %v1088_v12 = vadd.f32 %v1655_v57, %v1087_v9 }
 0x33d   : > { %v1115_v13 = vpack.c.bf16 %v1088_v12, %v1085_v10  ;;  %v1124_v14 = vmul.bf16 1045249613, %v1116_v11  ;;  %vm1120_vm0 = vcmp.ge.bf16.partialorder %v1116_v11, 0 }
 0x33f   : > { %vm1119_vm1 = vcmp.ge.bf16.partialorder %v1115_v13, 0  ;;  %v1123_v15 = vmul.bf16 1045249613, %v1115_v13  ;;  %v1128_v17 = vsel %vm1120_vm0, %v1116_v11, %v1124_v14 }
 0x341   : > { %v1127_v16 = vsel %vm1119_vm1, %v1115_v13, %v1123_v15 }
 0x342   : > { %1787 = vmatprep.mubr.bf16.mxu1 %v1127_v16 }
 0x343   : > { %1788 = vmatmul.mubr.bf16.vlgmr.msra.gmra.mxu1 %v1128_v17 }
 0x344   : > { %v1769_v18 = vpop.f32.mrf.mxu0 }
 0x345   : > { %v1109_v21 = vadd.f32 %v1769_v18, %v1655_v57 }
 0x346   : > { %v1100_v19 = vpop.f32.mrf.mxu0 }
 0x347   : > { %v1101_v24 = vadd.f32 %v1655_v57, %v1100_v19 }
 0x348   : > { %v1770_v20 = vpop.f32.mrf.mxu0 }
 0x349   : > { %v1112_v22 = vadd.f32 %v1770_v20, %v1655_v57 }
 0x34a   : > { %v1103_v23 = vpop.f32.mrf.mxu0 }
 0x34b   : > { %v1118_v25 = vpack.c.bf16 %v1112_v22, %v1109_v21  ;;  %v1104_v26 = vadd.f32 %v1655_v57, %v1103_v23 }
 0x34d   : > { %v1117_v27 = vpack.c.bf16 %v1104_v26, %v1101_v24  ;;  %v1126_v28 = vmul.bf16 1045249613, %v1118_v25  ;;  %vm1122_vm3 = vcmp.ge.bf16.partialorder %v1118_v25, 0 }
 0x34f   : > { %vm1121_vm2 = vcmp.ge.bf16.partialorder %v1117_v27, 0  ;;  %v1125_v29 = vmul.bf16 1045249613, %v1117_v27  ;;  %v1130_v31 = vsel %vm1122_vm3, %v1118_v25, %v1126_v28 }
 0x351   : > { %v1129_v30 = vsel %vm1121_vm2, %v1117_v27, %v1125_v29 }
 0x352   : > { %1791 = vmatprep.mubr.bf16.mxu1 %v1129_v30 }
 0x353   : > { %1792 = vmatmul.mubr.bf16.gmra.mxu1 %v1130_v31 }
 0x403   : > { %v1789_v33 = vpop.f32.mrf.mxu1 }
 0x404   : > { %v2767_v34 = vadd.f32 %v1789_v33, %v1664_v32 }
 0x405   : > { %v1233_v35 = vpop.f32.mrf.mxu1 }
 0x406   : > { %v2769_v36 = vadd.f32 %v1664_v32, %v1233_v35  ;;  %v1266_v37 = vmul.f32 %v2767_v34, %v2767_v34 }
 0x407   : > { %v1790_v38 = vpop.f32.mrf.mxu1 }
 0x408   : > { %v2773_v39 = vadd.f32 %v1790_v38, %v1664_v32  ;;  %1276 = vadd.xlane.f32.xlu1 %v1266_v37  ;;  %v1264_v40 = vmul.f32 %v2769_v36, %v2769_v36 }
 0x409   : > { %v1236_v41 = vpop.f32.mrf.mxu1 }
 0x40a   : > { %v2777_v42 = vadd.f32 %v1664_v32, %v1236_v41  ;;  %1272 = vadd.xlane.f32.xlu0 %v1264_v40  ;;  %v1267_v43 = vmul.f32 %v2773_v39, %v2773_v39 }
 0x40c   : > { %1278 = vadd.xlane.f32.xlu1 %v1267_v43  ;;  %v1265_v44 = vmul.f32 %v2777_v42, %v2777_v42 }
 0x40e   : > { %1274 = vadd.xlane.f32.xlu0 %v1265_v44 }
 0x413   : > { %v1793_v45 = vpop.f32.mrf.mxu1 }
 0x414   : > { %v2785_v49 = vadd.f32 %v1793_v45, %v1664_v32 }
 0x415   : > { %v1249_v46 = vpop.f32.mrf.mxu1 }
 0x416   : > { %v2783_v47 = vadd.f32 %v1664_v32, %v1249_v46  ;;  %v1270_v56 = vmul.f32 %v2785_v49, %v2785_v49 }
 0x417   : > { %v1794_v48 = vpop.f32.mrf.mxu1 }
 0x418   : > { %v1268_v50 = vmul.f32 %v2783_v47, %v2783_v47  ;;  %v2791_v54 = vadd.f32 %v1794_v48, %v1664_v32 }
 0x419   : > { %v1252_v52 = vpop.f32.mrf.mxu1 }
 0x41a   : > { %v2789_v53 = vadd.f32 %v1664_v32, %v1252_v52  ;;  %1280 = vadd.xlane.f32.xlu0 %v1268_v50  ;;  %v1271_v58 = vmul.f32 %v2791_v54, %v2791_v54 }
 0x41c   : > { %v1269_v55 = vmul.f32 %v2789_v53, %v2789_v53 }
 0x41e   : > { %1282 = vadd.xlane.f32.xlu1 %v1269_v55  ;;  %1284 = vadd.xlane.f32.xlu0 %v1270_v56 }
 0x422   : > { %1286 = vadd.xlane.f32.xlu1 %v1271_v58 }
 0x423   : > { %2209 = shalt.err (!%p2206_p10)
}
 0x424   : > { %s2210_s18 = scalar_lea.hbm %s2807_s4, 1024  ;;  %s2214_s16 = scalar_lea.hbm %s2994_s7, 6144 }
 0x425   : > { %p2211_p1 = scmp.ne.s32.totalorder %s2807_s4, %s2210_s18  ;;  %p2215_p9 = scmp.lt.s32.totalorder %s2807_s4, %s2994_s7 }
 0x426   : > { %p2216_p13 = scmp.lt.s32.totalorder %s2214_s16, %s2210_s18 }
 0x427   : > { %p2212_p12 = pnand %p2211_p1, %p2995_p2 }
 0x428   : > { %p2217_p11 = por %p2216_p13, %p2215_p9 }
 0x429   : > { %p2213_p5 = pneg %p2212_p12 }
 0x42b   : > { %p2218_p0 = pnand %p2217_p11, %p2213_p5 }
 0x42d   : > { %2221 = shalt.err (!%p2218_p0)
}
 0x42e   : > { %s2377_s2 = smov 128   ;;  %s2378_s22 = smov 8   ;;  %v1327_v22 = vrot.slane %v2759_v51, 4  ;;  %v1348_v41 = vstv %s2346_s11  ;;  %vm1346_vm4 = vcmask 1040384   ;;  %v1355_v45 = vld [vmem:[%s2702_s13] sm:$0x3] }
 0x42f   : > { %1817 = dma.vmem_to_hbm [thread:$0]  (%p2995_p2), %s2802_s21, 1024, %s2807_s4, %s1365_s8, %s2377_s2, %s2377_s2, %s2378_s22   ;;  %vm1349_vm5 = vcmp.eq.s32.totalorder %v1348_v41, 0  ;;  %vm1350_vm6 = vcmp.eq.s32.totalorder %v1348_v41, 1  ;;  %vm1351_vm7 = vcmp.eq.s32.totalorder %v1348_v41, 2 }
 0x430   : > { %v1328_v28 = vadd.f32 %v1327_v22, %v2759_v51  ;;  %s1796_s3 = smul.u32 96, %s2350_s12  ;;  %v1356_v46 = vld [vmem:[%s2702_s13 + $0x2] sm:$0x3]  ;;  %s1403_s19 = sshll.u32 %s2702_s13, 4  ;;  %s2853_s19 = int_to_ptr.vmem [resolvable:$true] %s1403_s19 }
 0x431   : > { %s2997_s12 = sld [smem:[#allocation37_spill]]  ;;  %s1370_s17 = scalar_lea.sflag [#allocation15], %s2664_s25 }
 0x432   : > { %s2222_s18 = scalar_lea.vmem %s2853_s19, 96  ;;  %s2379_s23 = smov [#allocation14]  }
 0x433   : > { %p2223_p2 = scmp.ne.s32.totalorder %s2853_s19, %s2222_s18  ;;  %s2226_s20 = sshll.u32 %s2379_s23, 4  ;;  %s2227_s20 = int_to_ptr.vmem [resolvable:$false] %s2226_s20 }
 0x434   : > { %s2228_s16 = scalar_lea.vmem %s2227_s20, 192  ;;  %p2229_p4 = scmp.lt.s32.totalorder %s2853_s19, %s2227_s20 }
 0x435   : > { %p2224_p8 = pnand %p2223_p2, %p2625_p7  ;;  %p2230_p3 = scmp.lt.s32.totalorder %s2228_s16, %s2222_s18 }
 0x437   : > { %s2998_s8 = smov %s2997_s12  ;;  %s2851_s24 = scalar_lea.hbm %s2997_s12, %s1796_s3 }
 0x438   : > { %p2225_p6 = pneg %p2224_p8  ;;  %p2231_p10 = por %p2230_p3, %p2229_p4 }
 0x43a   : > { %p2232_p1 = pnand %p2231_p10, %p2225_p6 }
 0x491   : > { %v1277_v60 = vpop.xlane.xlu1 %1276 }
 0x492   : > { %v1290_v1 = vmax.f32 %v1277_v60, 1e-24 }
 0x493   : > { %v1273_v59 = vpop.xlane.xlu0 %1272 }
 0x494   : > { %v1288_v62 = vmax.f32 %v1273_v59, 1e-24 }
 0x495   : > { %v1279_v2 = vpop.xlane.xlu1 %1278 }
 0x496   : > { %v1291_v3 = vmax.f32 %v1279_v2, 1e-24 }
 0x497   : > { %v1275_v61 = vpop.xlane.xlu0 %1274 }
 0x498   : > { %v1289_v0 = vmax.f32 %v1275_v61, 1e-24 }
 0x49a   : > { %2020 = vrsqrt.f32 %v1289_v0 }
 0x49b   : > { %2022 = vrsqrt.f32 %v1288_v62 }
 0x49c   : > { %2024 = vrsqrt.f32 %v1290_v1 }
 0x49d   : > { %2026 = vrsqrt.f32 %v1291_v3 }
 0x4a3   : > { %v1281_v4 = vpop.xlane.xlu0 %1280 }
 0x4a4   : > { %v1292_v5 = vmax.f32 %v1281_v4, 1e-24 }
 0x4a6   : > { %2028 = vrsqrt.f32 %v1292_v5 }
 0x4a7   : > { %v2021_v57 = vpop.eup %2020  ;;  %v1283_v63 = vpop.xlane.xlu1 %1282 }
 0x4a8   : > { %v1285_v6 = vpop.xlane.xlu0 %1284  ;;  %v1293_v7 = vmax.f32 %v1283_v63, 1e-24  ;;  %v2023_v9 = vpop.eup %2022  ;;  %v1305_v10 = vmul.f32 %v2021_v57, %v2777_v42 }
 0x4a9   : > { %v1294_v8 = vmax.f32 %v1285_v6, 1e-24  ;;  %v1304_v12 = vmul.f32 %v2023_v9, %v2769_v36  ;;  %v2025_v14 = vpop.eup %2024 }
 0x4aa   : > { %2030 = vrsqrt.f32 %v1293_v7  ;;  %v1306_v16 = vmul.f32 %v2025_v14, %v2767_v34  ;;  %v2027_v17 = vpop.eup %2026  ;;  %v1329_v34 = vrot.slane %v1328_v28, 2 }
 0x4ab   : > { %2032 = vrsqrt.f32 %v1294_v8  ;;  %v1287_v11 = vpop.xlane.xlu1 %1286  ;;  %v1333_v15 = vadd.f32 %v1305_v10, %v1304_v12  ;;  %v1307_v20 = vmul.f32 %v2027_v17, %v2773_v39 }
 0x4ac   : > { %v1295_v13 = vmax.f32 %v1287_v11, 1e-24  ;;  %v1330_v37 = vadd.f32 %v1329_v34, %v1328_v28 }
 0x4ad   : > { %v1334_v18 = vadd.f32 %v1333_v15, %v1306_v16 }
 0x4ae   : > { %2034 = vrsqrt.f32 %v1295_v13  ;;  %v1331_v40 = vrot.slane %v1330_v37, 1 }
 0x4af   : > { %v1335_v23 = vadd.f32 %v1334_v18, %v1307_v20 }
 0x4b0   : > { %v1332_v43 = vadd.f32 %v1331_v40, %v1330_v37 }
 0x4b3   : > { %v2029_v19 = vpop.eup %2028 }
 0x4b4   : > { %v1308_v21 = vmul.f32 %v2029_v19, %v2783_v47  ;;  %v1357_v47 = vld [vmem:[%s2702_s13 + $0x4] sm:$0x3] }
 0x4b6   : > { %v1336_v26 = vadd.f32 %v1335_v23, %v1308_v21 }
 0x4b7   : > { %v2031_v24 = vpop.eup %2030 }
 0x4b8   : > { %v2033_v25 = vpop.eup %2032  ;;  %v1309_v27 = vmul.f32 %v2031_v24, %v2789_v53 }
 0x4b9   : > { %v1310_v30 = vmul.f32 %v2033_v25, %v2785_v49 }
 0x4ba   : > { %v1337_v29 = vadd.f32 %v1336_v26, %v1309_v27 }
 0x4bb   : > { %v2035_v31 = vpop.eup %2034 }
 0x4bc   : > { %v1338_v32 = vadd.f32 %v1337_v29, %v1310_v30  ;;  %v1311_v33 = vmul.f32 %v2035_v31, %v2791_v54 }
 0x4be   : > { %v1339_v35 = vadd.f32 %v1338_v32, %v1311_v33 }
 0x4c0   : > { %v1340_v36 = vrot.slane %v1339_v35, 4 }
 0x4c2   : > { %v1341_v38 = vadd.f32 %v1340_v36, %v1339_v35 }
 0x4c4   : > { %v1342_v39 = vrot.slane %v1341_v38, 2 }
 0x4c6   : > { %v1343_v51 = vadd.f32 %v1342_v39, %v1341_v38 }
 0x4c8   : > { %v1344_v42 = vrot.slane %v1343_v51, 1 }
 0x4ca   : > { %v1345_v44 = vadd.f32 %v1344_v42, %v1343_v51 }
 0x4cc   : > { %v1347_v48 = vsel %vm1346_vm4, %v1332_v43, %v1345_v44 }
 0x4cd   : > { %v1352_v49 = vsel %vm1349_vm5, %v1347_v48, 0.0  ;;  %v1353_v50 = vsel %vm1350_vm6, %v1347_v48, 0.0  ;;  %v1354_v52 = vsel %vm1351_vm7, %v1347_v48, 0.0 }
 0x4ce   : > { %v1358_v53 = vadd.f32 %v1355_v45, %v1352_v49  ;;  %v1359_v54 = vadd.f32 %v1356_v46, %v1353_v50  ;;  %v1360_v55 = vadd.f32 %v1357_v47, %v1354_v52 }
 0x4d0   : > { %1361 = vst [vmem:[%s2702_s13] sm:$0x3] %v1358_v53  ;;  %1362 = vst [vmem:[%s2702_s13 + $0x2] sm:$0x3] %v1359_v54 }
 0x4d1   : > { %1363 = vst [vmem:[%s2702_s13 + $0x4] sm:$0x3] %v1360_v55 }
 0x4d2   : > { %2235 = shalt.err (!%p2232_p1)
}
 0x4d3   : > { %s2236_s13 = scalar_lea.hbm %s2851_s24, 96  ;;  %s2240_s2 = scalar_lea.hbm %s2998_s8, 192 }
 0x4d4   : > { %p2237_p12 = scmp.ne.s32.totalorder %s2851_s24, %s2236_s13  ;;  %p2241_p13 = scmp.lt.s32.totalorder %s2851_s24, %s2998_s8 }
 0x4d5   : > { %p2242_p11 = scmp.lt.s32.totalorder %s2240_s2, %s2236_s13 }
 0x4d6   : > { %p2238_p5 = pnand %p2237_p12, %p2625_p7 }
 0x4d7   : > { %p2243_p0 = por %p2242_p11, %p2241_p13 }
 0x4d8   : > { %p2239_p9 = pneg %p2238_p5 }
 0x4da   : > { %p2244_p2 = pnand %p2243_p0, %p2239_p9 }
 0x4dc   : > { %2247 = shalt.err (!%p2244_p2)
}
 0x4dd   : > { %s2380_s11 = smov 32   ;;  %s2381_s4 = smov 2  }
 0x4de   : > { %1818 = dma.vmem_to_hbm [thread:$0]  (%p2625_p7), %s2853_s19, 96, %s2851_s24, %s1370_s17, %s2380_s11, %s2380_s11, %s2381_s4  }
 0x4df PF: > { %s2999_s12 = sld [smem:[#allocation23_spill]]  ;;  %p1857_p8 = scmp.ge.s32.totalorder %s2362_s15, 2 }
 0x4e0   : > { %s3000_s18 = sld [smem:[#allocation29_spill]] }
 0x4e5   : > { %s1418_s23 = sand.u32 1, %s2999_s12  }
 0x4e6   : > { %p3001_p6 = scmp.ne.s32.totalorder %s3000_s18, 0  ;;  %s1419_s20 = scalar_lea.sflag [#allocation4], %s1418_s23 }
 0x4e8   : > { %p1842_p4 = pnand %p1857_p8, %p3001_p6 }
 0x4ea   : > { %p1843_p3 = pneg %p1842_p4 }
 0x4ec   : > { %2313 = dma.done.wait (%p1843_p3), %s1419_s20, 1024  }
 0x4ed   : > { %2315 = vsyncadd (%p1843_p3), %s1419_s20, 4294966272  ;;  %s1427_s16 = sand.u32 1, %s2334_s30   ;;  %p3002_p10 = scmp.ne.s32.totalorder %s2984_s5, 0 }
 0x4ee   : > { %s1428_s25 = scalar_lea.sflag [#allocation15], %s1427_s16 }
 0x4ef   : > { %p1845_p1 = pnand %p1857_p8, %p3002_p10 }
 0x4f1   : > { %p1846_p12 = pneg %p1845_p1 }
 0x4f3   : > { %2317 = dma.done.wait (%p1846_p12), %s1428_s25, 96  }
 0x4f4   : > { %2319 = vsyncadd (%p1846_p12), %s1428_s25, 4294967200  ;;  %s33_s15 = sadd.s32 1, %s2362_s15   ;;  %s3003_s19 = smov %s2644_s27 }
 0x4f5   : > { %p30_p7 = scmp.ge.s32.totalorder %s33_s15, 8   ;;  %s3004_s11 = sld [smem:[#allocation24_spill]] }
 0x4f6   : > { %s3005_s12 = sld [smem:[#allocation25_spill]]  ;;  %s3008_s27 = smov %s2326_s28 }
 0x4f7   : > { %s3006_s13 = sld [smem:[#allocation26_spill]]  ;;  %s3009_s28 = smov %s2330_s29 }
 0x4f8   : > { %s3007_s14 = sld [smem:[#allocation27_spill]]  ;;  %s3010_s29 = smov %s3003_s19 }
 0x4f9   : > { %s3011_s30 = smov %s2338_s9  ;;  %s3012_s9 = smov %s2342_s10 }
 0x4fa   : > { %s3013_s10 = smov %s2632_s0  ;;  %32 = sbr.rel (!%p30_p7) target bundleno = 23 (0x17), region = 143 }
 0x4ff   :  { %1433 = vsyncpa [#allocation3], 1 }
 0x500   :  { %1435 = vsyncpa [#allocation3 + $0x1], 1 }
 0x501   :  { %1436 = vsyncpa [#allocation6], 1 }
 0x502   :  { %1438 = vsyncpa [#allocation6 + $0x1], 1 }
 0x503   :  { %1439 = vsyncpa [#allocation9], 1 }
 0x504   :  { %1440 = vsyncpa [#allocation12], 1 }
 0x505   :  { %1441 = vsyncpa [#allocation4], 1 }
 0x506   :  { %1443 = vsyncpa [#allocation4 + $0x1], 1 }
 0x507   :  { %1444 = vsyncpa [#allocation15], 1 }
 0x508   :  { %1446 = vsyncpa [#allocation15 + $0x1], 1 }

</bundles_post_ra>
